<compile_context>
chip_gen: v7x
topology: tpu7x:2x2x1
jax: 0.10.0
libtpu: 0.0.40
codegen_flags: <defaults>
</compile_context>

<pallas_src>
import math
import functools

import jax
import jax.numpy as jnp
from jax.experimental import pallas as pl
from jax.experimental.pallas import tpu as pltpu

LATENT = 32
Z_PAD = 128      # lane-dense width for the latent output (extra columns are exactly zero)


# ----------------------------- kernel -----------------------------------
def fcae_kernel(x_ref,
                e_w0, e_b0, e_w1, e_b1, e_w2, e_b2, e_w3, e_b3, e_w4, e_b4, e_w5, e_b5,
                d_wz, d_wic, d_b0, d_w1, d_b1, d_w2, d_b2, d_w3, d_b3, d_w4, d_b4,
                d_w5, d_b5,
                out_ref, z_ref, *, ic_dim):

    def lin(h, w_ref, b_ref):
        # bf16 operands feed the MXU; accumulate + bias in f32.
        return jnp.dot(h.astype(w_ref.dtype), w_ref[...],
                       preferred_element_type=jnp.float32) + b_ref[...]

    def lin_relu(h, w_ref, b_ref):
        return jnp.maximum(lin(h, w_ref, b_ref), 0.0)

    x = x_ref[...]                 # (TB, T*X), f32
    x0 = x[:, :ic_dim]             # row-major reshape => t=0 slice is the first X lanes

    # -------- encoder: T*X -> 256 -> 256 -> 256 -> 128 -> 128 -> 32 (padded to 128 lanes)
    h = lin_relu(x, e_w0, e_b0)
    h = lin_relu(h, e_w1, e_b1)
    h = lin_relu(h, e_w2, e_b2)
    h = lin_relu(h, e_w3, e_b3)
    h = lin_relu(h, e_w4, e_b4)
    z = lin(h, e_w5, e_b5)         # (TB, Z_PAD); columns >= LATENT are exactly zero
    z_ref[...] = z.astype(z_ref.dtype)

    # -------- decoder: (32 + X) -> 128 -> 128 -> 256 -> 256 -> 256 -> T*X
    # first layer = concat(z, x0) @ W0 + b0, as split matmul (padded z rows of W_z are zero)
    h = jnp.maximum(
        jnp.dot(z.astype(d_wz.dtype), d_wz[...], preferred_element_type=jnp.float32)
        + jnp.dot(x0.astype(d_wic.dtype), d_wic[...], preferred_element_type=jnp.float32)
        + d_b0[...],
        0.0,
    )
    h = lin_relu(h, d_w1, d_b1)
    h = lin_relu(h, d_w2, d_b2)
    h = lin_relu(h, d_w3, d_b3)
    h = lin_relu(h, d_w4, d_b4)
    out = lin(h, d_w5, d_b5)       # no ReLU on output
    out_ref[...] = out.astype(out_ref.dtype)


# ----------------------------- wrapper -----------------------------------
def fcae_forward(x, params, *, block_b=512):
    """x: (B, T, X) float32; params: flat list in kernel argument order."""
    B, T, X = x.shape
    flat = T * X
    x_flat = x.reshape(B, flat).astype(jnp.float32)

    # Batch tile: multiple of 8 (f32 sublane granularity), capped at block_b.
    tb = min(block_b, ((B + 7) // 8) * 8)
    tb = max(8, ((tb + 7) // 8) * 8)
    n_blocks = pl.cdiv(B, tb)
    b_pad = n_blocks * tb
    if b_pad != B:
        x_flat = jnp.pad(x_flat, ((0, b_pad - B), (0, 0)))

    inputs = [x_flat] + list(params)

    in_specs = [pl.BlockSpec((tb, flat), lambda i: (i, 0))] + [
        # Weights/biases: full-array block, constant block index => stay resident in VMEM.
        pl.BlockSpec(p.shape, lambda i: (0, 0)) for p in params
    ]

    out_shape = (
        jax.ShapeDtypeStruct((b_pad, flat), jnp.float32),    # decoded output (flat)
        jax.ShapeDtypeStruct((b_pad, Z_PAD), jnp.float32),   # lane-dense padded latent
    )
    out_specs = (
        pl.BlockSpec((tb, flat), lambda i: (i, 0)),
        pl.BlockSpec((tb, Z_PAD), lambda i: (i, 0)),
    )

    kernel = functools.partial(fcae_kernel, ic_dim=X)

    out_flat, z_pad = pl.pallas_call(
        kernel,
        grid=(n_blocks,),
        in_specs=in_specs,
        out_specs=out_specs,
        out_shape=out_shape,
        compiler_params=pltpu.CompilerParams(
            dimension_semantics=("parallel",)),   # v7x: shard batch tiles across 2 TCs
    )(*inputs)

    out = out_flat[:B].reshape(B, T, X)
    z = z_pad[:B, :LATENT]
    return out, z


# ------------------------ parameter construction -------------------------
def make_linear(key, fan_in, fan_out, w_dtype=jnp.bfloat16):
    """PyTorch-style Linear init; W stored as (in, out), bias (1, out) f32."""
    kw, kb = jax.random.split(key)
    bound = 1.0 / math.sqrt(fan_in)
    w = jax.random.uniform(kw, (fan_in, fan_out), jnp.float32, -bound, bound)
    b = jax.random.uniform(kb, (1, fan_out), jnp.float32, -bound, bound)
    return w.astype(w_dtype), b


def make_fcae_params(key, T, X, w_dtype=jnp.bfloat16):
    latent = LATENT
    ic_dim = X
    flat = T * X

    enc_dims = [(flat, 256), (256, 256), (256, 256), (256, 128), (128, 128), (128, latent)]
    dec_dims = [(latent + ic_dim, 128), (128, 128), (128, 256), (256, 256), (256, 256), (256, flat)]

    keys = jax.random.split(key, len(enc_dims) + len(dec_dims))

    params = []
    # encoder (last layer zero-padded to Z_PAD output columns for a lane-dense z store)
    for idx, (k, (fi, fo)) in enumerate(zip(keys[:len(enc_dims)], enc_dims)):
        w, b = make_linear(k, fi, fo, w_dtype)
        if idx == len(enc_dims) - 1:
            w = jnp.pad(w, ((0, 0), (0, Z_PAD - latent)))
            b = jnp.pad(b, ((0, 0), (0, Z_PAD - latent)))
        params += [w, b]

    # decoder layer 0: split concat(z, x0) weight into latent part and IC part;
    # latent part zero-padded to Z_PAD input rows to match the padded z.
    w0, b0 = make_linear(keys[len(enc_dims)], *dec_dims[0], w_dtype)
    w_z = jnp.pad(w0[:latent, :], ((0, Z_PAD - latent), (0, 0)))
    w_ic = w0[latent:, :]
    params += [w_z, w_ic, b0]

    # remaining decoder layers
    for k, (fi, fo) in zip(keys[len(enc_dims) + 1:], dec_dims[1:]):
        w, b = make_linear(k, fi, fo, w_dtype)
        params += [w, b]

    return params


# --------------------------- pure-JAX reference ---------------------------
def fcae_reference(x, params):
    """Same math as the kernel (same bf16 casts) for a correctness check."""
    B, T, X = x.shape
    x_flat = x.reshape(B, T * X).astype(jnp.float32)
    x0 = x_flat[:, :X]

    def lin(h, w, b):
        return jnp.dot(h.astype(w.dtype), w, preferred_element_type=jnp.float32) + b

    (e_w0, e_b0, e_w1, e_b1, e_w2, e_b2, e_w3, e_b3, e_w4, e_b4, e_w5, e_b5,
     d_wz, d_wic, d_b0, d_w1, d_b1, d_w2, d_b2, d_w3, d_b3, d_w4, d_b4,
     d_w5, d_b5) = params

    h = x_flat
    for w, b in ((e_w0, e_b0), (e_w1, e_b1), (e_w2, e_b2), (e_w3, e_b3), (e_w4, e_b4)):
        h = jnp.maximum(lin(h, w, b), 0.0)
    z = lin(h, e_w5, e_b5)

    h = jnp.maximum(lin(z, d_wz, jnp.zeros_like(d_b0)) + lin(x0, d_wic, d_b0), 0.0)
    for w, b in ((d_w1, d_b1), (d_w2, d_b2), (d_w3, d_b3), (d_w4, d_b4)):
        h = jnp.maximum(lin(h, w, b), 0.0)
    out = lin(h, d_w5, d_b5)
    return out.reshape(B, T, X), z[:, :LATENT]


# ------------------------------- main -------------------------------------
if __name__ == "__main__":
    key = jax.random.PRNGKey(0)
    kx, kp = jax.random.split(key)

    # input_dim = (T, X) = (8, 16)  ->  self.input_dim = 128, ic_dim = 16
    B, T, X = 2, 8, 16
    x = jax.random.normal(kx, (B, T, X), dtype=jnp.float32)

    params = make_fcae_params(kp, T, X)

    out, z = fcae_forward(x, params)
    jax.block_until_ready((out, z))

    assert out.shape == (B, T, X)
    assert z.shape == (B, LATENT)

    out_ref, z_ref = fcae_reference(x, params)
    assert jnp.allclose(out, out_ref, atol=5e-2, rtol=5e-2)
    assert jnp.allclose(z, z_ref, atol=5e-2, rtol=5e-2)

    print("KERNEL_OK")
</pallas_src>

<mosaic_0001>
module attributes {stable_mosaic.version = 11 : i64} {
  func.func @fcae_kernel(%arg0: i32, %arg1: memref<8x128xf32, #tpu.memory_space<vmem>>, %arg2: memref<128x256xbf16, #tpu.memory_space<vmem>>, %arg3: memref<1x256xf32, #tpu.memory_space<vmem>>, %arg4: memref<256x256xbf16, #tpu.memory_space<vmem>>, %arg5: memref<1x256xf32, #tpu.memory_space<vmem>>, %arg6: memref<256x256xbf16, #tpu.memory_space<vmem>>, %arg7: memref<1x256xf32, #tpu.memory_space<vmem>>, %arg8: memref<256x128xbf16, #tpu.memory_space<vmem>>, %arg9: memref<1x128xf32, #tpu.memory_space<vmem>>, %arg10: memref<128x128xbf16, #tpu.memory_space<vmem>>, %arg11: memref<1x128xf32, #tpu.memory_space<vmem>>, %arg12: memref<128x128xbf16, #tpu.memory_space<vmem>>, %arg13: memref<1x128xf32, #tpu.memory_space<vmem>>, %arg14: memref<128x128xbf16, #tpu.memory_space<vmem>>, %arg15: memref<16x128xbf16, #tpu.memory_space<vmem>>, %arg16: memref<1x128xf32, #tpu.memory_space<vmem>>, %arg17: memref<128x128xbf16, #tpu.memory_space<vmem>>, %arg18: memref<1x128xf32, #tpu.memory_space<vmem>>, %arg19: memref<128x256xbf16, #tpu.memory_space<vmem>>, %arg20: memref<1x256xf32, #tpu.memory_space<vmem>>, %arg21: memref<256x256xbf16, #tpu.memory_space<vmem>>, %arg22: memref<1x256xf32, #tpu.memory_space<vmem>>, %arg23: memref<256x256xbf16, #tpu.memory_space<vmem>>, %arg24: memref<1x256xf32, #tpu.memory_space<vmem>>, %arg25: memref<256x128xbf16, #tpu.memory_space<vmem>>, %arg26: memref<1x128xf32, #tpu.memory_space<vmem>>, %arg27: memref<8x128xf32, #tpu.memory_space<vmem>>, %arg28: memref<8x128xf32, #tpu.memory_space<vmem>>) attributes {dimension_semantics = [#tpu.dimension_semantics<parallel>], iteration_bounds = array<i64: 1>, scalar_prefetch = 0 : i64, scratch_operands = 0 : i64, tpu.core_type = #tpu.core_type<tc>, window_params = [{transform_indices = @transform_0, window_bounds = array<i64: 8, 128>}, {pipeline_mode = #tpu.pipeline_mode<synchronous>, transform_indices = @transform_1, window_bounds = array<i64: 128, 256>}, {pipeline_mode = #tpu.pipeline_mode<synchronous>, transform_indices = @transform_2, window_bounds = array<i64: 1, 256>}, {pipeline_mode = #tpu.pipeline_mode<synchronous>, transform_indices = @transform_3, window_bounds = array<i64: 256, 256>}, {pipeline_mode = #tpu.pipeline_mode<synchronous>, transform_indices = @transform_4, window_bounds = array<i64: 1, 256>}, {pipeline_mode = #tpu.pipeline_mode<synchronous>, transform_indices = @transform_5, window_bounds = array<i64: 256, 256>}, {pipeline_mode = #tpu.pipeline_mode<synchronous>, transform_indices = @transform_6, window_bounds = array<i64: 1, 256>}, {pipeline_mode = #tpu.pipeline_mode<synchronous>, transform_indices = @transform_7, window_bounds = array<i64: 256, 128>}, {pipeline_mode = #tpu.pipeline_mode<synchronous>, transform_indices = @transform_8, window_bounds = array<i64: 1, 128>}, {pipeline_mode = #tpu.pipeline_mode<synchronous>, transform_indices = @transform_9, window_bounds = array<i64: 128, 128>}, {pipeline_mode = #tpu.pipeline_mode<synchronous>, transform_indices = @transform_10, window_bounds = array<i64: 1, 128>}, {pipeline_mode = #tpu.pipeline_mode<synchronous>, transform_indices = @transform_11, window_bounds = array<i64: 128, 128>}, {pipeline_mode = #tpu.pipeline_mode<synchronous>, transform_indices = @transform_12, window_bounds = array<i64: 1, 128>}, {pipeline_mode = #tpu.pipeline_mode<synchronous>, transform_indices = @transform_13, window_bounds = array<i64: 128, 128>}, {pipeline_mode = #tpu.pipeline_mode<synchronous>, transform_indices = @transform_14, window_bounds = array<i64: 16, 128>}, {pipeline_mode = #tpu.pipeline_mode<synchronous>, transform_indices = @transform_15, window_bounds = array<i64: 1, 128>}, {pipeline_mode = #tpu.pipeline_mode<synchronous>, transform_indices = @transform_16, window_bounds = array<i64: 128, 128>}, {pipeline_mode = #tpu.pipeline_mode<synchronous>, transform_indices = @transform_17, window_bounds = array<i64: 1, 128>}, {pipeline_mode = #tpu.pipeline_mode<synchronous>, transform_indices = @transform_18, window_bounds = array<i64: 128, 256>}, {pipeline_mode = #tpu.pipeline_mode<synchronous>, transform_indices = @transform_19, window_bounds = array<i64: 1, 256>}, {pipeline_mode = #tpu.pipeline_mode<synchronous>, transform_indices = @transform_20, window_bounds = array<i64: 256, 256>}, {pipeline_mode = #tpu.pipeline_mode<synchronous>, transform_indices = @transform_21, window_bounds = array<i64: 1, 256>}, {pipeline_mode = #tpu.pipeline_mode<synchronous>, transform_indices = @transform_22, window_bounds = array<i64: 256, 256>}, {pipeline_mode = #tpu.pipeline_mode<synchronous>, transform_indices = @transform_23, window_bounds = array<i64: 1, 256>}, {pipeline_mode = #tpu.pipeline_mode<synchronous>, transform_indices = @transform_24, window_bounds = array<i64: 256, 128>}, {pipeline_mode = #tpu.pipeline_mode<synchronous>, transform_indices = @transform_25, window_bounds = array<i64: 1, 128>}, {transform_indices = @transform_26, window_bounds = array<i64: 8, 128>}, {transform_indices = @transform_27, window_bounds = array<i64: 8, 128>}]} {
    %c0 = arith.constant 0 : index
    %c0_0 = arith.constant 0 : index
    %0 = vector.load %arg1[%c0, %c0_0] : memref<8x128xf32, #tpu.memory_space<vmem>>, vector<8x128xf32>
    %1 = vector.extract_strided_slice %0 {offsets = [0, 0], sizes = [8, 16], strides = [1, 1]} : vector<8x128xf32> to vector<8x16xf32>
    %2 = arith.truncf %0 : vector<8x128xf32> to vector<8x128xbf16>
    %c0_1 = arith.constant 0 : index
    %c0_2 = arith.constant 0 : index
    %3 = vector.load %arg2[%c0_1, %c0_2] : memref<128x256xbf16, #tpu.memory_space<vmem>>, vector<128x256xbf16>
    %cst = arith.constant dense<0.000000e+00> : vector<8x256xf32>
    %4 = tpu.matmul %2, %3, %cst {dimension_numbers = #tpu.dot_dimension_numbers<[1], [0], [0], [1], [0, 0, 1, 1], [], []>} : vector<8x128xbf16>, vector<128x256xbf16>, vector<8x256xf32> -> vector<8x256xf32>
    %c0_3 = arith.constant 0 : index
    %c0_4 = arith.constant 0 : index
    %5 = vector.load %arg3[%c0_3, %c0_4] : memref<1x256xf32, #tpu.memory_space<vmem>>, vector<1x256xf32>
    %6 = vector.broadcast %5 : vector<1x256xf32> to vector<8x256xf32>
    %7 = arith.addf %4, %6 : vector<8x256xf32>
    %cst_5 = arith.constant 0.000000e+00 : f32
    %8 = vector.broadcast %cst_5 : f32 to vector<8x256xf32>
    %9 = arith.maximumf %7, %8 : vector<8x256xf32>
    %10 = arith.truncf %9 : vector<8x256xf32> to vector<8x256xbf16>
    %c0_6 = arith.constant 0 : index
    %c0_7 = arith.constant 0 : index
    %11 = vector.load %arg4[%c0_6, %c0_7] : memref<256x256xbf16, #tpu.memory_space<vmem>>, vector<256x256xbf16>
    %cst_8 = arith.constant dense<0.000000e+00> : vector<8x256xf32>
    %12 = tpu.matmul %10, %11, %cst_8 {dimension_numbers = #tpu.dot_dimension_numbers<[1], [0], [0], [1], [0, 0, 1, 1], [], []>} : vector<8x256xbf16>, vector<256x256xbf16>, vector<8x256xf32> -> vector<8x256xf32>
    %c0_9 = arith.constant 0 : index
    %c0_10 = arith.constant 0 : index
    %13 = vector.load %arg5[%c0_9, %c0_10] : memref<1x256xf32, #tpu.memory_space<vmem>>, vector<1x256xf32>
    %14 = vector.broadcast %13 : vector<1x256xf32> to vector<8x256xf32>
    %15 = arith.addf %12, %14 : vector<8x256xf32>
    %cst_11 = arith.constant 0.000000e+00 : f32
    %16 = vector.broadcast %cst_11 : f32 to vector<8x256xf32>
    %17 = arith.maximumf %15, %16 : vector<8x256xf32>
    %18 = arith.truncf %17 : vector<8x256xf32> to vector<8x256xbf16>
    %c0_12 = arith.constant 0 : index
    %c0_13 = arith.constant 0 : index
    %19 = vector.load %arg6[%c0_12, %c0_13] : memref<256x256xbf16, #tpu.memory_space<vmem>>, vector<256x256xbf16>
    %cst_14 = arith.constant dense<0.000000e+00> : vector<8x256xf32>
    %20 = tpu.matmul %18, %19, %cst_14 {dimension_numbers = #tpu.dot_dimension_numbers<[1], [0], [0], [1], [0, 0, 1, 1], [], []>} : vector<8x256xbf16>, vector<256x256xbf16>, vector<8x256xf32> -> vector<8x256xf32>
    %c0_15 = arith.constant 0 : index
    %c0_16 = arith.constant 0 : index
    %21 = vector.load %arg7[%c0_15, %c0_16] : memref<1x256xf32, #tpu.memory_space<vmem>>, vector<1x256xf32>
    %22 = vector.broadcast %21 : vector<1x256xf32> to vector<8x256xf32>
    %23 = arith.addf %20, %22 : vector<8x256xf32>
    %cst_17 = arith.constant 0.000000e+00 : f32
    %24 = vector.broadcast %cst_17 : f32 to vector<8x256xf32>
    %25 = arith.maximumf %23, %24 : vector<8x256xf32>
    %26 = arith.truncf %25 : vector<8x256xf32> to vector<8x256xbf16>
    %c0_18 = arith.constant 0 : index
    %c0_19 = arith.constant 0 : index
    %27 = vector.load %arg8[%c0_18, %c0_19] : memref<256x128xbf16, #tpu.memory_space<vmem>>, vector<256x128xbf16>
    %cst_20 = arith.constant dense<0.000000e+00> : vector<8x128xf32>
    %28 = tpu.matmul %26, %27, %cst_20 {dimension_numbers = #tpu.dot_dimension_numbers<[1], [0], [0], [1], [0, 0, 1, 1], [], []>} : vector<8x256xbf16>, vector<256x128xbf16>, vector<8x128xf32> -> vector<8x128xf32>
    %c0_21 = arith.constant 0 : index
    %c0_22 = arith.constant 0 : index
    %29 = vector.load %arg9[%c0_21, %c0_22] : memref<1x128xf32, #tpu.memory_space<vmem>>, vector<1x128xf32>
    %30 = vector.broadcast %29 : vector<1x128xf32> to vector<8x128xf32>
    %31 = arith.addf %28, %30 : vector<8x128xf32>
    %cst_23 = arith.constant 0.000000e+00 : f32
    %32 = vector.broadcast %cst_23 : f32 to vector<8x128xf32>
    %33 = arith.maximumf %31, %32 : vector<8x128xf32>
    %34 = arith.truncf %33 : vector<8x128xf32> to vector<8x128xbf16>
    %c0_24 = arith.constant 0 : index
    %c0_25 = arith.constant 0 : index
    %35 = vector.load %arg10[%c0_24, %c0_25] : memref<128x128xbf16, #tpu.memory_space<vmem>>, vector<128x128xbf16>
    %cst_26 = arith.constant dense<0.000000e+00> : vector<8x128xf32>
    %36 = tpu.matmul %34, %35, %cst_26 {dimension_numbers = #tpu.dot_dimension_numbers<[1], [0], [0], [1], [0, 0, 1, 1], [], []>} : vector<8x128xbf16>, vector<128x128xbf16>, vector<8x128xf32> -> vector<8x128xf32>
    %c0_27 = arith.constant 0 : index
    %c0_28 = arith.constant 0 : index
    %37 = vector.load %arg11[%c0_27, %c0_28] : memref<1x128xf32, #tpu.memory_space<vmem>>, vector<1x128xf32>
    %38 = vector.broadcast %37 : vector<1x128xf32> to vector<8x128xf32>
    %39 = arith.addf %36, %38 : vector<8x128xf32>
    %cst_29 = arith.constant 0.000000e+00 : f32
    %40 = vector.broadcast %cst_29 : f32 to vector<8x128xf32>
    %41 = arith.maximumf %39, %40 : vector<8x128xf32>
    %42 = arith.truncf %41 : vector<8x128xf32> to vector<8x128xbf16>
    %c0_30 = arith.constant 0 : index
    %c0_31 = arith.constant 0 : index
    %43 = vector.load %arg12[%c0_30, %c0_31] : memref<128x128xbf16, #tpu.memory_space<vmem>>, vector<128x128xbf16>
    %cst_32 = arith.constant dense<0.000000e+00> : vector<8x128xf32>
    %44 = tpu.matmul %42, %43, %cst_32 {dimension_numbers = #tpu.dot_dimension_numbers<[1], [0], [0], [1], [0, 0, 1, 1], [], []>} : vector<8x128xbf16>, vector<128x128xbf16>, vector<8x128xf32> -> vector<8x128xf32>
    %c0_33 = arith.constant 0 : index
    %c0_34 = arith.constant 0 : index
    %45 = vector.load %arg13[%c0_33, %c0_34] : memref<1x128xf32, #tpu.memory_space<vmem>>, vector<1x128xf32>
    %46 = vector.broadcast %45 : vector<1x128xf32> to vector<8x128xf32>
    %47 = arith.addf %44, %46 : vector<8x128xf32>
    %c0_35 = arith.constant 0 : index
    %c0_36 = arith.constant 0 : index
    %48 = vector.load %arg28[%c0_35, %c0_36] : memref<8x128xf32, #tpu.memory_space<vmem>>, vector<8x128xf32>
    tpu.vector_store %arg28[%c0_35, %c0_36], %47 {strides = array<i32>} : memref<8x128xf32, #tpu.memory_space<vmem>>, vector<8x128xf32>,
    %49 = arith.truncf %47 : vector<8x128xf32> to vector<8x128xbf16>
    %c0_37 = arith.constant 0 : index
    %c0_38 = arith.constant 0 : index
    %50 = vector.load %arg14[%c0_37, %c0_38] : memref<128x128xbf16, #tpu.memory_space<vmem>>, vector<128x128xbf16>
    %cst_39 = arith.constant dense<0.000000e+00> : vector<8x128xf32>
    %51 = tpu.matmul %49, %50, %cst_39 {dimension_numbers = #tpu.dot_dimension_numbers<[1], [0], [0], [1], [0, 0, 1, 1], [], []>} : vector<8x128xbf16>, vector<128x128xbf16>, vector<8x128xf32> -> vector<8x128xf32>
    %52 = arith.truncf %1 : vector<8x16xf32> to vector<8x16xbf16>
    %c0_40 = arith.constant 0 : index
    %c0_41 = arith.constant 0 : index
    %53 = vector.load %arg15[%c0_40, %c0_41] : memref<16x128xbf16, #tpu.memory_space<vmem>>, vector<16x128xbf16>
    %cst_42 = arith.constant dense<0.000000e+00> : vector<8x128xf32>
    %54 = tpu.matmul %52, %53, %cst_42 {dimension_numbers = #tpu.dot_dimension_numbers<[1], [0], [0], [1], [0, 0, 1, 1], [], []>} : vector<8x16xbf16>, vector<16x128xbf16>, vector<8x128xf32> -> vector<8x128xf32>
    %55 = arith.addf %51, %54 : vector<8x128xf32>
    %c0_43 = arith.constant 0 : index
    %c0_44 = arith.constant 0 : index
    %56 = vector.load %arg16[%c0_43, %c0_44] : memref<1x128xf32, #tpu.memory_space<vmem>>, vector<1x128xf32>
    %57 = vector.broadcast %56 : vector<1x128xf32> to vector<8x128xf32>
    %58 = arith.addf %55, %57 : vector<8x128xf32>
    %cst_45 = arith.constant 0.000000e+00 : f32
    %59 = vector.broadcast %cst_45 : f32 to vector<8x128xf32>
    %60 = arith.maximumf %58, %59 : vector<8x128xf32>
    %61 = arith.truncf %60 : vector<8x128xf32> to vector<8x128xbf16>
    %c0_46 = arith.constant 0 : index
    %c0_47 = arith.constant 0 : index
    %62 = vector.load %arg17[%c0_46, %c0_47] : memref<128x128xbf16, #tpu.memory_space<vmem>>, vector<128x128xbf16>
    %cst_48 = arith.constant dense<0.000000e+00> : vector<8x128xf32>
    %63 = tpu.matmul %61, %62, %cst_48 {dimension_numbers = #tpu.dot_dimension_numbers<[1], [0], [0], [1], [0, 0, 1, 1], [], []>} : vector<8x128xbf16>, vector<128x128xbf16>, vector<8x128xf32> -> vector<8x128xf32>
    %c0_49 = arith.constant 0 : index
    %c0_50 = arith.constant 0 : index
    %64 = vector.load %arg18[%c0_49, %c0_50] : memref<1x128xf32, #tpu.memory_space<vmem>>, vector<1x128xf32>
    %65 = vector.broadcast %64 : vector<1x128xf32> to vector<8x128xf32>
    %66 = arith.addf %63, %65 : vector<8x128xf32>
    %cst_51 = arith.constant 0.000000e+00 : f32
    %67 = vector.broadcast %cst_51 : f32 to vector<8x128xf32>
    %68 = arith.maximumf %66, %67 : vector<8x128xf32>
    %69 = arith.truncf %68 : vector<8x128xf32> to vector<8x128xbf16>
    %c0_52 = arith.constant 0 : index
    %c0_53 = arith.constant 0 : index
    %70 = vector.load %arg19[%c0_52, %c0_53] : memref<128x256xbf16, #tpu.memory_space<vmem>>, vector<128x256xbf16>
    %cst_54 = arith.constant dense<0.000000e+00> : vector<8x256xf32>
    %71 = tpu.matmul %69, %70, %cst_54 {dimension_numbers = #tpu.dot_dimension_numbers<[1], [0], [0], [1], [0, 0, 1, 1], [], []>} : vector<8x128xbf16>, vector<128x256xbf16>, vector<8x256xf32> -> vector<8x256xf32>
    %c0_55 = arith.constant 0 : index
    %c0_56 = arith.constant 0 : index
    %72 = vector.load %arg20[%c0_55, %c0_56] : memref<1x256xf32, #tpu.memory_space<vmem>>, vector<1x256xf32>
    %73 = vector.broadcast %72 : vector<1x256xf32> to vector<8x256xf32>
    %74 = arith.addf %71, %73 : vector<8x256xf32>
    %cst_57 = arith.constant 0.000000e+00 : f32
    %75 = vector.broadcast %cst_57 : f32 to vector<8x256xf32>
    %76 = arith.maximumf %74, %75 : vector<8x256xf32>
    %77 = arith.truncf %76 : vector<8x256xf32> to vector<8x256xbf16>
    %c0_58 = arith.constant 0 : index
    %c0_59 = arith.constant 0 : index
    %78 = vector.load %arg21[%c0_58, %c0_59] : memref<256x256xbf16, #tpu.memory_space<vmem>>, vector<256x256xbf16>
    %cst_60 = arith.constant dense<0.000000e+00> : vector<8x256xf32>
    %79 = tpu.matmul %77, %78, %cst_60 {dimension_numbers = #tpu.dot_dimension_numbers<[1], [0], [0], [1], [0, 0, 1, 1], [], []>} : vector<8x256xbf16>, vector<256x256xbf16>, vector<8x256xf32> -> vector<8x256xf32>
    %c0_61 = arith.constant 0 : index
    %c0_62 = arith.constant 0 : index
    %80 = vector.load %arg22[%c0_61, %c0_62] : memref<1x256xf32, #tpu.memory_space<vmem>>, vector<1x256xf32>
    %81 = vector.broadcast %80 : vector<1x256xf32> to vector<8x256xf32>
    %82 = arith.addf %79, %81 : vector<8x256xf32>
    %cst_63 = arith.constant 0.000000e+00 : f32
    %83 = vector.broadcast %cst_63 : f32 to vector<8x256xf32>
    %84 = arith.maximumf %82, %83 : vector<8x256xf32>
    %85 = arith.truncf %84 : vector<8x256xf32> to vector<8x256xbf16>
    %c0_64 = arith.constant 0 : index
    %c0_65 = arith.constant 0 : index
    %86 = vector.load %arg23[%c0_64, %c0_65] : memref<256x256xbf16, #tpu.memory_space<vmem>>, vector<256x256xbf16>
    %cst_66 = arith.constant dense<0.000000e+00> : vector<8x256xf32>
    %87 = tpu.matmul %85, %86, %cst_66 {dimension_numbers = #tpu.dot_dimension_numbers<[1], [0], [0], [1], [0, 0, 1, 1], [], []>} : vector<8x256xbf16>, vector<256x256xbf16>, vector<8x256xf32> -> vector<8x256xf32>
    %c0_67 = arith.constant 0 : index
    %c0_68 = arith.constant 0 : index
    %88 = vector.load %arg24[%c0_67, %c0_68] : memref<1x256xf32, #tpu.memory_space<vmem>>, vector<1x256xf32>
    %89 = vector.broadcast %88 : vector<1x256xf32> to vector<8x256xf32>
    %90 = arith.addf %87, %89 : vector<8x256xf32>
    %cst_69 = arith.constant 0.000000e+00 : f32
    %91 = vector.broadcast %cst_69 : f32 to vector<8x256xf32>
    %92 = arith.maximumf %90, %91 : vector<8x256xf32>
    %93 = arith.truncf %92 : vector<8x256xf32> to vector<8x256xbf16>
    %c0_70 = arith.constant 0 : index
    %c0_71 = arith.constant 0 : index
    %94 = vector.load %arg25[%c0_70, %c0_71] : memref<256x128xbf16, #tpu.memory_space<vmem>>, vector<256x128xbf16>
    %cst_72 = arith.constant dense<0.000000e+00> : vector<8x128xf32>
    %95 = tpu.matmul %93, %94, %cst_72 {dimension_numbers = #tpu.dot_dimension_numbers<[1], [0], [0], [1], [0, 0, 1, 1], [], []>} : vector<8x256xbf16>, vector<256x128xbf16>, vector<8x128xf32> -> vector<8x128xf32>
    %c0_73 = arith.constant 0 : index
    %c0_74 = arith.constant 0 : index
    %96 = vector.load %arg26[%c0_73, %c0_74] : memref<1x128xf32, #tpu.memory_space<vmem>>, vector<1x128xf32>
    %97 = vector.broadcast %96 : vector<1x128xf32> to vector<8x128xf32>
    %98 = arith.addf %95, %97 : vector<8x128xf32>
    %c0_75 = arith.constant 0 : index
    %c0_76 = arith.constant 0 : index
    %99 = vector.load %arg27[%c0_75, %c0_76] : memref<8x128xf32, #tpu.memory_space<vmem>>, vector<8x128xf32>
    tpu.vector_store %arg27[%c0_75, %c0_76], %98 {strides = array<i32>} : memref<8x128xf32, #tpu.memory_space<vmem>>, vector<8x128xf32>,
    return
  }
  func.func @transform_0(%arg0: i32) -> (i32, i32) {
    %c0_i32 = arith.constant 0 : i32
    %c0_i32_0 = arith.constant 0 : i32
    return %arg0, %c0_i32 : i32, i32
  }
  func.func @transform_1(%arg0: i32) -> (i32, i32) {
    %c0_i32 = arith.constant 0 : i32
    %c0_i32_0 = arith.constant 0 : i32
    %c0_i32_1 = arith.constant 0 : i32
    return %c0_i32, %c0_i32_0 : i32, i32
  }
  func.func @transform_2(%arg0: i32) -> (i32, i32) {
    %c0_i32 = arith.constant 0 : i32
    %c0_i32_0 = arith.constant 0 : i32
    %c0_i32_1 = arith.constant 0 : i32
    return %c0_i32, %c0_i32_0 : i32, i32
  }
  func.func @transform_3(%arg0: i32) -> (i32, i32) {
    %c0_i32 = arith.constant 0 : i32
    %c0_i32_0 = arith.constant 0 : i32
    %c0_i32_1 = arith.constant 0 : i32
    return %c0_i32, %c0_i32_0 : i32, i32
  }
  func.func @transform_4(%arg0: i32) -> (i32, i32) {
    %c0_i32 = arith.constant 0 : i32
    %c0_i32_0 = arith.constant 0 : i32
    %c0_i32_1 = arith.constant 0 : i32
    return %c0_i32, %c0_i32_0 : i32, i32
  }
  func.func @transform_5(%arg0: i32) -> (i32, i32) {
    %c0_i32 = arith.constant 0 : i32
    %c0_i32_0 = arith.constant 0 : i32
    %c0_i32_1 = arith.constant 0 : i32
    return %c0_i32, %c0_i32_0 : i32, i32
  }
  func.func @transform_6(%arg0: i32) -> (i32, i32) {
    %c0_i32 = arith.constant 0 : i32
    %c0_i32_0 = arith.constant 0 : i32
    %c0_i32_1 = arith.constant 0 : i32
    return %c0_i32, %c0_i32_0 : i32, i32
  }
  func.func @transform_7(%arg0: i32) -> (i32, i32) {
    %c0_i32 = arith.constant 0 : i32
    %c0_i32_0 = arith.constant 0 : i32
    %c0_i32_1 = arith.constant 0 : i32
    return %c0_i32, %c0_i32_0 : i32, i32
  }
  func.func @transform_8(%arg0: i32) -> (i32, i32) {
    %c0_i32 = arith.constant 0 : i32
    %c0_i32_0 = arith.constant 0 : i32
    %c0_i32_1 = arith.constant 0 : i32
    return %c0_i32, %c0_i32_0 : i32, i32
  }
  func.func @transform_9(%arg0: i32) -> (i32, i32) {
    %c0_i32 = arith.constant 0 : i32
    %c0_i32_0 = arith.constant 0 : i32
    %c0_i32_1 = arith.constant 0 : i32
    return %c0_i32, %c0_i32_0 : i32, i32
  }
  func.func @transform_10(%arg0: i32) -> (i32, i32) {
    %c0_i32 = arith.constant 0 : i32
    %c0_i32_0 = arith.constant 0 : i32
    %c0_i32_1 = arith.constant 0 : i32
    return %c0_i32, %c0_i32_0 : i32, i32
  }
  func.func @transform_11(%arg0: i32) -> (i32, i32) {
    %c0_i32 = arith.constant 0 : i32
    %c0_i32_0 = arith.constant 0 : i32
    %c0_i32_1 = arith.constant 0 : i32
    return %c0_i32, %c0_i32_0 : i32, i32
  }
  func.func @transform_12(%arg0: i32) -> (i32, i32) {
    %c0_i32 = arith.constant 0 : i32
    %c0_i32_0 = arith.constant 0 : i32
    %c0_i32_1 = arith.constant 0 : i32
    return %c0_i32, %c0_i32_0 : i32, i32
  }
  func.func @transform_13(%arg0: i32) -> (i32, i32) {
    %c0_i32 = arith.constant 0 : i32
    %c0_i32_0 = arith.constant 0 : i32
    %c0_i32_1 = arith.constant 0 : i32
    return %c0_i32, %c0_i32_0 : i32, i32
  }
  func.func @transform_14(%arg0: i32) -> (i32, i32) {
    %c0_i32 = arith.constant 0 : i32
    %c0_i32_0 = arith.constant 0 : i32
    %c0_i32_1 = arith.constant 0 : i32
    return %c0_i32, %c0_i32_0 : i32, i32
  }
  func.func @transform_15(%arg0: i32) -> (i32, i32) {
    %c0_i32 = arith.constant 0 : i32
    %c0_i32_0 = arith.constant 0 : i32
    %c0_i32_1 = arith.constant 0 : i32
    return %c0_i32, %c0_i32_0 : i32, i32
  }
  func.func @transform_16(%arg0: i32) -> (i32, i32) {
    %c0_i32 = arith.constant 0 : i32
    %c0_i32_0 = arith.constant 0 : i32
    %c0_i32_1 = arith.constant 0 : i32
    return %c0_i32, %c0_i32_0 : i32, i32
  }
  func.func @transform_17(%arg0: i32) -> (i32, i32) {
    %c0_i32 = arith.constant 0 : i32
    %c0_i32_0 = arith.constant 0 : i32
    %c0_i32_1 = arith.constant 0 : i32
    return %c0_i32, %c0_i32_0 : i32, i32
  }
  func.func @transform_18(%arg0: i32) -> (i32, i32) {
    %c0_i32 = arith.constant 0 : i32
    %c0_i32_0 = arith.constant 0 : i32
    %c0_i32_1 = arith.constant 0 : i32
    return %c0_i32, %c0_i32_0 : i32, i32
  }
  func.func @transform_19(%arg0: i32) -> (i32, i32) {
    %c0_i32 = arith.constant 0 : i32
    %c0_i32_0 = arith.constant 0 : i32
    %c0_i32_1 = arith.constant 0 : i32
    return %c0_i32, %c0_i32_0 : i32, i32
  }
  func.func @transform_20(%arg0: i32) -> (i32, i32) {
    %c0_i32 = arith.constant 0 : i32
    %c0_i32_0 = arith.constant 0 : i32
    %c0_i32_1 = arith.constant 0 : i32
    return %c0_i32, %c0_i32_0 : i32, i32
  }
  func.func @transform_21(%arg0: i32) -> (i32, i32) {
    %c0_i32 = arith.constant 0 : i32
    %c0_i32_0 = arith.constant 0 : i32
    %c0_i32_1 = arith.constant 0 : i32
    return %c0_i32, %c0_i32_0 : i32, i32
  }
  func.func @transform_22(%arg0: i32) -> (i32, i32) {
    %c0_i32 = arith.constant 0 : i32
    %c0_i32_0 = arith.constant 0 : i32
    %c0_i32_1 = arith.constant 0 : i32
    return %c0_i32, %c0_i32_0 : i32, i32
  }
  func.func @transform_23(%arg0: i32) -> (i32, i32) {
    %c0_i32 = arith.constant 0 : i32
    %c0_i32_0 = arith.constant 0 : i32
    %c0_i32_1 = arith.constant 0 : i32
    return %c0_i32, %c0_i32_0 : i32, i32
  }
  func.func @transform_24(%arg0: i32) -> (i32, i32) {
    %c0_i32 = arith.constant 0 : i32
    %c0_i32_0 = arith.constant 0 : i32
    %c0_i32_1 = arith.constant 0 : i32
    return %c0_i32, %c0_i32_0 : i32, i32
  }
  func.func @transform_25(%arg0: i32) -> (i32, i32) {
    %c0_i32 = arith.constant 0 : i32
    %c0_i32_0 = arith.constant 0 : i32
    %c0_i32_1 = arith.constant 0 : i32
    return %c0_i32, %c0_i32_0 : i32, i32
  }
  func.func @transform_26(%arg0: i32) -> (i32, i32) {
    %c0_i32 = arith.constant 0 : i32
    %c0_i32_0 = arith.constant 0 : i32
    return %arg0, %c0_i32 : i32, i32
  }
  func.func @transform_27(%arg0: i32) -> (i32, i32) {
    %c0_i32 = arith.constant 0 : i32
    %c0_i32_0 = arith.constant 0 : i32
    return %arg0, %c0_i32 : i32, i32
  }
}

</mosaic_0001>

<bundles_post_ra>
// kernel: tpu_custom_call.1
= control target key start
LH: loop header
LB: loop body
LE: loop exit
PB: predicated region body
PF: predicated region fallthrough
CT: control target
= control target key end

     0   :  { %s4051_s0 = inlined_call_operand.hbm [shape: f32[8,128], index: 0, kind: input, shape index: {}]   ;;  %s4052_s1 = inlined_call_operand.hbm [shape: bf16[128,256], index: 1, kind: input, shape index: {}]   ;;  %s4053_s2 = inlined_call_operand.vmem [shape: f32[1,256], index: 2, kind: input, shape index: {}]   ;;  %s4054_s3 = inlined_call_operand.hbm [shape: bf16[256,256], index: 3, kind: input, shape index: {}]   ;;  %s4055_s4 = inlined_call_operand.vmem [shape: f32[1,256], index: 4, kind: input, shape index: {}]   ;;  %s4056_s5 = inlined_call_operand.hbm [shape: bf16[256,256], index: 5, kind: input, shape index: {}]   ;;  %s4057_s6 = inlined_call_operand.vmem [shape: f32[1,256], index: 6, kind: input, shape index: {}]   ;;  %s4058_s7 = inlined_call_operand.hbm [shape: bf16[256,128], index: 7, kind: input, shape index: {}]   ;;  %s4059_s8 = inlined_call_operand.vmem [shape: f32[1,128], index: 8, kind: input, shape index: {}]   ;;  %s4060_s9 = inlined_call_operand.hbm [shape: bf16[128,128], index: 9, kind: input, shape index: {}]   ;;  %s4061_s10 = inlined_call_operand.vmem [shape: f32[1,128], index: 10, kind: input, shape index: {}]   ;;  %s4062_s11 = inlined_call_operand.hbm [shape: bf16[128,128], index: 11, kind: input, shape index: {}]   ;;  %s4063_s12 = inlined_call_operand.vmem [shape: f32[1,128], index: 12, kind: input, shape index: {}]   ;;  %s4064_s13 = inlined_call_operand.hbm [shape: bf16[128,128], index: 13, kind: input, shape index: {}]   ;;  %s4065_s14 = inlined_call_operand.vmem [shape: bf16[16,128], index: 14, kind: input, shape index: {}]   ;;  %s4066_s15 = inlined_call_operand.vmem [shape: f32[1,128], index: 15, kind: input, shape index: {}]   ;;  %s4067_s16 = inlined_call_operand.hbm [shape: bf16[128,128], index: 16, kind: input, shape index: {}]   ;;  %s4068_s17 = inlined_call_operand.vmem [shape: f32[1,128], index: 17, kind: input, shape index: {}]   ;;  %s4069_s18 = inlined_call_operand.hbm [shape: bf16[128,256], index: 18, kind: input, shape index: {}]   ;;  %s4070_s19 = inlined_call_operand.vmem [shape: f32[1,256], index: 19, kind: input, shape index: {}]   ;;  %s4071_s20 = inlined_call_operand.hbm [shape: bf16[256,256], index: 20, kind: input, shape index: {}]   ;;  %s4072_s21 = inlined_call_operand.vmem [shape: f32[1,256], index: 21, kind: input, shape index: {}]   ;;  %s4073_s22 = inlined_call_operand.hbm [shape: bf16[256,256], index: 22, kind: input, shape index: {}]   ;;  %s4074_s23 = inlined_call_operand.vmem [shape: f32[1,256], index: 23, kind: input, shape index: {}]   ;;  %s4075_s24 = inlined_call_operand.hbm [shape: bf16[256,128], index: 24, kind: input, shape index: {}]   ;;  %s4076_s25 = inlined_call_operand.vmem [shape: f32[1,128], index: 25, kind: input, shape index: {}]   ;;  %s4077_s26 = inlined_call_operand.hbm [shape: f32[8,128], index: 26, kind: output, shape index: {0}]   ;;  %s4078_s27 = inlined_call_operand.hbm [shape: f32[8,128], index: 27, kind: output, shape index: {1}]  }
   0x1   :  { %4088 = sst [smem:[#allocation35_spill]] %s4051_s0 }
   0x2   :  { %4089 = sst [smem:[#allocation36_spill]] %s4052_s1 }
   0x3   :  { %4090 = sst [smem:[#allocation37_spill]] %s4053_s2 }
   0x4   :  { %4091 = sst [smem:[#allocation38_spill]] %s4054_s3 }
   0x5   :  { %4092 = sst [smem:[#allocation39_spill]] %s4055_s4 }
   0x6   :  { %4093 = sst [smem:[#allocation40_spill]] %s4056_s5 }
   0x7   :  { %4094 = sst [smem:[#allocation41_spill]] %s4057_s6 }
   0x8   :  { %4095 = sst [smem:[#allocation42_spill]] %s4058_s7 }
   0x9   :  { %4096 = sst [smem:[#allocation43_spill]] %s4059_s8 }
   0xa   :  { %4097 = sst [smem:[#allocation44_spill]] %s4060_s9 }
   0xb   :  { %4098 = sst [smem:[#allocation45_spill]] %s4061_s10 }
   0xc   :  { %4099 = sst [smem:[#allocation46_spill]] %s4062_s11 }
   0xd   :  { %4100 = sst [smem:[#allocation47_spill]] %s4076_s25 }
   0xe   :  { %4101 = sst [smem:[#allocation48_spill]] %s4077_s26 }
   0xf   :  { %4102 = sst [smem:[#allocation49_spill]] %s4078_s27 }
  0x10   :  { %33 = vsyncpa [#allocation3], 0 }
  0x11   :  { %34 = vsyncpa [#allocation6], 0 }
  0x12   :  { %35 = vsyncpa [#allocation9], 0 }
  0x13   :  { %36 = vsyncpa [#allocation12], 0 }
  0x14   :  { %37 = vsyncpa [#allocation15], 0 }
  0x15   :  { %38 = vsyncpa [#allocation18], 0 }
  0x16   :  { %39 = vsyncpa [#allocation21], 0 }
  0x17   :  { %40 = vsyncpa [#allocation4], 0 }
  0x18   :  { %41 = vsyncpa [#allocation25], 0  ;;  %s3534_s7 = smov [#allocation5]   ;;  %s4103_s9 = sld [smem:[#allocation36_spill]] }
  0x19   :  { %s57_s4 = sshll.u32 %s3534_s7, 4  ;;  %s58_s4 = int_to_ptr.vmem [resolvable:$true] %s57_s4 }
  0x1e   :  { %s3186_s5 = scalar_lea.hbm %s4103_s9, 2048 }
  0x1f   :  { %p3187_p0 = scmp.ne.s32.totalorder %s4103_s9, %s3186_s5  ;;  %p3190_p1 = scmp.lt.u32.totalorder %s3186_s5, %s4103_s9 }
  0x21   :  { %p3192_p2 = pnand %p3190_p1, %p3187_p0 }
  0x23   :  { %3195 = shalt.err (!%p3192_p2)
}
  0x24   :  { %s3196_s1 = scalar_lea.vmem %s58_s4, 2048  ;;  %p3201_p4 = scmp.lt.s32.totalorder %s58_s4, %s58_s4 }
  0x25   :  { %p3197_p3 = scmp.ne.s32.totalorder %s58_s4, %s3196_s1  ;;  %p3202_p5 = scmp.lt.s32.totalorder %s3196_s1, %s3196_s1 }
  0x27   :  { %p3203_p6 = por %p3202_p5, %p3201_p4 }
  0x29   :  { %p3204_p7 = pnand %p3203_p6, %p3197_p3 }
  0x2b   :  { %3207 = shalt.err (!%p3204_p7)
}
  0x2c   :  { %s3535_s6 = smov 128   ;;  %s3536_s11 = smov 8  }
  0x2d   :  { %63 = dma.hbm_to_vmem [thread:$0]  %s4103_s9, 2048, %s58_s4, [#allocation6], %s3535_s6, %s3535_s6, %s3536_s11  }
  0x2e   :  { %s3537_s7 = smov [#allocation8]   ;;  %s4104_s28 = sld [smem:[#allocation40_spill]] }
  0x2f   :  { %s85_s8 = sshll.u32 %s3537_s7, 4  ;;  %s86_s8 = int_to_ptr.vmem [resolvable:$true] %s85_s8 }
  0x34   :  { %s3208_s0 = scalar_lea.hbm %s4104_s28, 4096 }
  0x35   :  { %p3209_p8 = scmp.ne.s32.totalorder %s4104_s28, %s3208_s0  ;;  %p3212_p9 = scmp.lt.u32.totalorder %s3208_s0, %s4104_s28 }
  0x37   :  { %p3214_p10 = pnand %p3212_p9, %p3209_p8 }
  0x39   :  { %3217 = shalt.err (!%p3214_p10)
}
  0x3a   :  { %s3218_s25 = scalar_lea.vmem %s86_s8, 4096  ;;  %p3223_p12 = scmp.lt.s32.totalorder %s86_s8, %s86_s8 }
  0x3b   :  { %p3219_p11 = scmp.ne.s32.totalorder %s86_s8, %s3218_s25  ;;  %p3224_p13 = scmp.lt.s32.totalorder %s3218_s25, %s3218_s25 }
  0x3d   :  { %p3225_p0 = por %p3224_p13, %p3223_p12 }
  0x3f   :  { %p3226_p1 = pnand %p3225_p0, %p3219_p11 }
  0x41   :  { %3229 = shalt.err (!%p3226_p1)
}
  0x42   :  { %91 = dma.hbm_to_vmem [thread:$0]  %s4104_s28, 4096, %s86_s8, [#allocation9], %s3535_s6, %s3535_s6, %s3536_s11  }
  0x43   :  { %s3538_s2 = smov [#allocation11]   ;;  %s3539_s26 = smov [#allocation14]  }
  0x44   :  { %s113_s3 = sshll.u32 %s3538_s2, 4  ;;  %s141_s7 = sshll.u32 %s3539_s26, 4  ;;  %s114_s3 = int_to_ptr.vmem [resolvable:$true] %s113_s3  ;;  %s3726_s7 = int_to_ptr.vmem [resolvable:$true] %s141_s7 }
  0x45   :  { %s4105_s25 = sld [smem:[#allocation44_spill]] }
  0x4b   :  { %s3230_s0 = scalar_lea.hbm %s4105_s25, 1024 }
  0x4c   :  { %p3231_p2 = scmp.ne.s32.totalorder %s4105_s25, %s3230_s0  ;;  %p3234_p3 = scmp.lt.u32.totalorder %s3230_s0, %s4105_s25 }
  0x4e   :  { %p3236_p4 = pnand %p3234_p3, %p3231_p2 }
  0x50   :  { %3239 = shalt.err (!%p3236_p4)
}
  0x51   :  { %s3240_s8 = scalar_lea.vmem %s114_s3, 1024  ;;  %p3245_p6 = scmp.lt.s32.totalorder %s114_s3, %s114_s3 }
  0x52   :  { %p3241_p5 = scmp.ne.s32.totalorder %s114_s3, %s3240_s8  ;;  %p3246_p7 = scmp.lt.s32.totalorder %s3240_s8, %s3240_s8 }
  0x54   :  { %p3247_p8 = por %p3246_p7, %p3245_p6 }
  0x56   :  { %p3248_p9 = pnand %p3247_p8, %p3241_p5 }
  0x58   :  { %3251 = shalt.err (!%p3248_p9)
}
  0x59   :  { %s3540_s28 = smov 64   ;;  %s3541_s4 = smov 4  }
  0x5a   :  { %119 = dma.hbm_to_vmem [thread:$0]  %s4105_s25, 1024, %s114_s3, [#allocation12], %s3540_s28, %s3540_s28, %s3541_s4  }
  0x5b   :  { %s3252_s30 = scalar_lea.hbm %s4064_s13, 1024 }
  0x5c   :  { %p3253_p10 = scmp.ne.s32.totalorder %s4064_s13, %s3252_s30  ;;  %p3256_p11 = scmp.lt.u32.totalorder %s3252_s30, %s4064_s13 }
  0x5e   :  { %p3258_p12 = pnand %p3256_p11, %p3253_p10 }
  0x60   :  { %3261 = shalt.err (!%p3258_p12)
}
  0x61   :  { %s3262_s1 = scalar_lea.vmem %s3726_s7, 1024  ;;  %p3267_p0 = scmp.lt.s32.totalorder %s3726_s7, %s3726_s7 }
  0x62   :  { %p3263_p13 = scmp.ne.s32.totalorder %s3726_s7, %s3262_s1  ;;  %p3268_p1 = scmp.lt.s32.totalorder %s3262_s1, %s3262_s1 }
  0x64   :  { %p3269_p2 = por %p3268_p1, %p3267_p0 }
  0x66   :  { %p3270_p3 = pnand %p3269_p2, %p3263_p13 }
  0x68   :  { %3273 = shalt.err (!%p3270_p3)
}
  0x69   :  { %147 = dma.hbm_to_vmem [thread:$0]  %s4064_s13, 1024, %s3726_s7, [#allocation15], %s3540_s28, %s3540_s28, %s3541_s4  }
  0x6a   :  { %s3542_s8 = smov [#allocation17]   ;;  %s3543_s2 = smov [#allocation20]  }
  0x6b   :  { %s171_s9 = sshll.u32 %s3542_s8, 4  ;;  %s199_s27 = sshll.u32 %s3543_s2, 4  ;;  %s172_s9 = int_to_ptr.vmem [resolvable:$true] %s171_s9  ;;  %s3763_s27 = int_to_ptr.vmem [resolvable:$true] %s199_s27 }
  0x6c   :  { %s3274_s5 = scalar_lea.hbm %s4069_s18, 2048 }
  0x6d   :  { %p3275_p4 = scmp.ne.s32.totalorder %s4069_s18, %s3274_s5  ;;  %p3278_p5 = scmp.lt.u32.totalorder %s3274_s5, %s4069_s18 }
  0x6f   :  { %p3280_p6 = pnand %p3278_p5, %p3275_p4 }
  0x71   :  { %3283 = shalt.err (!%p3280_p6)
}
  0x72   :  { %s3284_s13 = scalar_lea.vmem %s172_s9, 2048  ;;  %p3289_p8 = scmp.lt.s32.totalorder %s172_s9, %s172_s9 }
  0x73   :  { %p3285_p7 = scmp.ne.s32.totalorder %s172_s9, %s3284_s13  ;;  %p3290_p9 = scmp.lt.s32.totalorder %s3284_s13, %s3284_s13 }
  0x75   :  { %p3291_p10 = por %p3290_p9, %p3289_p8 }
  0x77   :  { %p3292_p11 = pnand %p3291_p10, %p3285_p7 }
  0x79   :  { %3295 = shalt.err (!%p3292_p11)
}
  0x7a   :  { %177 = dma.hbm_to_vmem [thread:$0]  %s4069_s18, 2048, %s172_s9, [#allocation18], %s3535_s6, %s3535_s6, %s3536_s11  }
  0x7b   :  { %s3296_s2 = scalar_lea.hbm %s4073_s22, 4096 }
  0x7c   :  { %p3297_p12 = scmp.ne.s32.totalorder %s4073_s22, %s3296_s2  ;;  %p3300_p13 = scmp.lt.u32.totalorder %s3296_s2, %s4073_s22 }
  0x7e   :  { %p3302_p0 = pnand %p3300_p13, %p3297_p12 }
  0x80   :  { %3305 = shalt.err (!%p3302_p0)
}
  0x81   :  { %s3306_s10 = scalar_lea.vmem %s3763_s27, 4096  ;;  %p3311_p2 = scmp.lt.s32.totalorder %s3763_s27, %s3763_s27 }
  0x82   :  { %p3307_p1 = scmp.ne.s32.totalorder %s3763_s27, %s3306_s10  ;;  %p3312_p3 = scmp.lt.s32.totalorder %s3306_s10, %s3306_s10 }
  0x84   :  { %p3313_p4 = por %p3312_p3, %p3311_p2 }
  0x86   :  { %p3314_p5 = pnand %p3313_p4, %p3307_p1 }
  0x88   :  { %3317 = shalt.err (!%p3314_p5)
}
  0x89   :  { %205 = dma.hbm_to_vmem [thread:$0]  %s4073_s22, 4096, %s3763_s27, [#allocation21], %s3535_s6, %s3535_s6, %s3536_s11  }
  0x8a   :  { %s3544_s29 = smov [#allocation2]   ;;  %s3545_s13 = smov [#allocation7]  }
  0x8b   :  { %s48_s1 = sshll.u32 %s3544_s29, 4  ;;  %s71_s7 = sshll.u32 %s3545_s13, 4  ;;  %s49_s1 = int_to_ptr.vmem [resolvable:$true] %s48_s1  ;;  %s3800_s7 = int_to_ptr.vmem [resolvable:$true] %s71_s7 }
  0x8c   :  { %s4106_s8 = sld [smem:[#allocation35_spill]] }
  0x92   :  { %s3318_s2 = scalar_lea.hbm %s4106_s8, 128 }
  0x93   :  { %p3319_p6 = scmp.ne.s32.totalorder %s4106_s8, %s3318_s2  ;;  %p3322_p7 = scmp.lt.u32.totalorder %s3318_s2, %s4106_s8 }
  0x95   :  { %p3324_p8 = pnand %p3322_p7, %p3319_p6 }
  0x97   :  { %3327 = shalt.err (!%p3324_p8)
}
  0x98   :  { %s3328_s22 = scalar_lea.vmem %s49_s1, 128  ;;  %p3333_p10 = scmp.lt.s32.totalorder %s49_s1, %s49_s1 }
  0x99   :  { %p3329_p9 = scmp.ne.s32.totalorder %s49_s1, %s3328_s22  ;;  %p3334_p11 = scmp.lt.s32.totalorder %s3328_s22, %s3328_s22 }
  0x9b   :  { %p3335_p12 = por %p3334_p11, %p3333_p10 }
  0x9d   :  { %p3336_p13 = pnand %p3335_p12, %p3329_p9 }
  0x9f   :  { %3339 = shalt.err (!%p3336_p13)
}
  0xa0   :  { %51 = dma.hbm_to_vmem [thread:$0]  %s4106_s8, 128, %s49_s1, [#allocation3]  }
  0xa1   :  { %s4107_s29 = sld [smem:[#allocation38_spill]] }
  0xa7   :  { %s3340_s13 = scalar_lea.hbm %s4107_s29, 4096 }
  0xa8   :  { %p3341_p0 = scmp.ne.s32.totalorder %s4107_s29, %s3340_s13  ;;  %p3344_p1 = scmp.lt.u32.totalorder %s3340_s13, %s4107_s29 }
  0xaa   :  { %p3346_p2 = pnand %p3344_p1, %p3341_p0 }
  0xac   :  { %3349 = shalt.err (!%p3346_p2)
}
  0xad   :  { %s3350_s30 = scalar_lea.vmem %s3800_s7, 4096  ;;  %p3355_p4 = scmp.lt.s32.totalorder %s3800_s7, %s3800_s7 }
  0xae   :  { %p3351_p3 = scmp.ne.s32.totalorder %s3800_s7, %s3350_s30  ;;  %p3356_p5 = scmp.lt.s32.totalorder %s3350_s30, %s3350_s30 }
  0xb0   :  { %p3357_p6 = por %p3356_p5, %p3355_p4 }
  0xb2   :  { %p3358_p7 = pnand %p3357_p6, %p3351_p3 }
  0xb4   :  { %3361 = shalt.err (!%p3358_p7)
}
  0xb5   :  { %77 = dma.hbm_to_vmem [thread:$0]  %s4107_s29, 4096, %s3800_s7, [#allocation6], %s3535_s6, %s3535_s6, %s3536_s11  }
  0xb6   :  { %s3546_s5 = smov [#allocation10]   ;;  %s3547_s22 = smov [#allocation13]  }
  0xb7   :  { %s99_s0 = sshll.u32 %s3546_s5, 4  ;;  %s127_s27 = sshll.u32 %s3547_s22, 4  ;;  %s100_s0 = int_to_ptr.vmem [resolvable:$true] %s99_s0  ;;  %s3834_s27 = int_to_ptr.vmem [resolvable:$true] %s127_s27 }
  0xb8   :  { %s4108_s9 = sld [smem:[#allocation42_spill]] }
  0xbe   :  { %s3362_s13 = scalar_lea.hbm %s4108_s9, 2048 }
  0xbf   :  { %p3363_p8 = scmp.ne.s32.totalorder %s4108_s9, %s3362_s13  ;;  %p3366_p9 = scmp.lt.u32.totalorder %s3362_s13, %s4108_s9 }
  0xc1   :  { %p3368_p10 = pnand %p3366_p9, %p3363_p8 }
  0xc3   :  { %3371 = shalt.err (!%p3368_p10)
}
  0xc4   :  { %s3372_s7 = scalar_lea.vmem %s100_s0, 2048  ;;  %p3377_p12 = scmp.lt.s32.totalorder %s100_s0, %s100_s0 }
  0xc5   :  { %p3373_p11 = scmp.ne.s32.totalorder %s100_s0, %s3372_s7  ;;  %p3378_p13 = scmp.lt.s32.totalorder %s3372_s7, %s3372_s7 }
  0xc7   :  { %p3379_p0 = por %p3378_p13, %p3377_p12 }
  0xc9   :  { %p3380_p1 = pnand %p3379_p0, %p3373_p11 }
  0xcb   :  { %3383 = shalt.err (!%p3380_p1)
}
  0xcc   :  { %105 = dma.hbm_to_vmem [thread:$0]  %s4108_s9, 2048, %s100_s0, [#allocation9], %s3540_s28, %s3540_s28, %s3541_s4  }
  0xcd   :  { %s4109_s5 = sld [smem:[#allocation46_spill]] }
  0xd3   :  { %s3384_s22 = scalar_lea.hbm %s4109_s5, 1024 }
  0xd4   :  { %p3385_p2 = scmp.ne.s32.totalorder %s4109_s5, %s3384_s22  ;;  %p3388_p3 = scmp.lt.u32.totalorder %s3384_s22, %s4109_s5 }
  0xd6   :  { %p3390_p4 = pnand %p3388_p3, %p3385_p2 }
  0xd8   :  { %3393 = shalt.err (!%p3390_p4)
}
  0xd9   :  { %s3394_s25 = scalar_lea.vmem %s3834_s27, 1024  ;;  %p3399_p6 = scmp.lt.s32.totalorder %s3834_s27, %s3834_s27 }
  0xda   :  { %p3395_p5 = scmp.ne.s32.totalorder %s3834_s27, %s3394_s25  ;;  %p3400_p7 = scmp.lt.s32.totalorder %s3394_s25, %s3394_s25 }
  0xdc   :  { %p3401_p8 = por %p3400_p7, %p3399_p6 }
  0xde   :  { %p3402_p9 = pnand %p3401_p8, %p3395_p5 }
  0xe0   :  { %3405 = shalt.err (!%p3402_p9)
}
  0xe1   :  { %133 = dma.hbm_to_vmem [thread:$0]  %s4109_s5, 1024, %s3834_s27, [#allocation12], %s3540_s28, %s3540_s28, %s3541_s4  }
  0xe2   :  { %s3548_s2 = smov [#allocation16]   ;;  %s3549_s7 = smov [#allocation19]  }
  0xe3   :  { %s157_s26 = sshll.u32 %s3548_s2, 4  ;;  %s185_s29 = sshll.u32 %s3549_s7, 4  ;;  %s158_s26 = int_to_ptr.vmem [resolvable:$true] %s157_s26  ;;  %s3871_s29 = int_to_ptr.vmem [resolvable:$true] %s185_s29 }
  0xe4   :  { %s3406_s8 = scalar_lea.hbm %s4067_s16, 1024 }
  0xe5   :  { %p3407_p10 = scmp.ne.s32.totalorder %s4067_s16, %s3406_s8  ;;  %p3410_p11 = scmp.lt.u32.totalorder %s3406_s8, %s4067_s16 }
  0xe7   :  { %p3412_p12 = pnand %p3410_p11, %p3407_p10 }
  0xe9   :  { %3415 = shalt.err (!%p3412_p12)
}
  0xea   :  { %s3416_s27 = scalar_lea.vmem %s158_s26, 1024  ;;  %p3421_p0 = scmp.lt.s32.totalorder %s158_s26, %s158_s26 }
  0xeb   :  { %p3417_p13 = scmp.ne.s32.totalorder %s158_s26, %s3416_s27  ;;  %p3422_p1 = scmp.lt.s32.totalorder %s3416_s27, %s3416_s27 }
  0xed   :  { %p3423_p2 = por %p3422_p1, %p3421_p0 }
  0xef   :  { %p3424_p3 = pnand %p3423_p2, %p3417_p13 }
  0xf1   :  { %3427 = shalt.err (!%p3424_p3)
}
  0xf2   :  { %163 = dma.hbm_to_vmem [thread:$0]  %s4067_s16, 1024, %s158_s26, [#allocation15], %s3540_s28, %s3540_s28, %s3541_s4  }
  0xf3   :  { %s3428_s9 = scalar_lea.hbm %s4071_s20, 4096 }
  0xf4   :  { %p3429_p4 = scmp.ne.s32.totalorder %s4071_s20, %s3428_s9  ;;  %p3432_p5 = scmp.lt.u32.totalorder %s3428_s9, %s4071_s20 }
  0xf6   :  { %p3434_p6 = pnand %p3432_p5, %p3429_p4 }
  0xf8   :  { %3437 = shalt.err (!%p3434_p6)
}
  0xf9   :  { %s3438_s8 = scalar_lea.vmem %s3871_s29, 4096  ;;  %p3443_p8 = scmp.lt.s32.totalorder %s3871_s29, %s3871_s29 }
  0xfa   :  { %p3439_p7 = scmp.ne.s32.totalorder %s3871_s29, %s3438_s8  ;;  %p3444_p9 = scmp.lt.s32.totalorder %s3438_s8, %s3438_s8 }
  0xfc   :  { %p3445_p10 = por %p3444_p9, %p3443_p8 }
  0xfe   :  { %p3446_p11 = pnand %p3445_p10, %p3439_p7 }
 0x100   :  { %3449 = shalt.err (!%p3446_p11)
}
 0x101   :  { %191 = dma.hbm_to_vmem [thread:$0]  %s4071_s20, 4096, %s3871_s29, [#allocation18], %s3535_s6, %s3535_s6, %s3536_s11  }
 0x102   :  { %s3550_s22 = smov [#allocation22]   ;;  %s3450_s27 = scalar_lea.hbm %s4075_s24, 2048 }
 0x103   :  { %s213_s10 = sshll.u32 %s3550_s22, 4  ;;  %p3451_p12 = scmp.ne.s32.totalorder %s4075_s24, %s3450_s27  ;;  %s214_s10 = int_to_ptr.vmem [resolvable:$true] %s213_s10 }
 0x104   :  { %p3454_p13 = scmp.lt.u32.totalorder %s3450_s27, %s4075_s24 }
 0x106   :  { %p3456_p0 = pnand %p3454_p13, %p3451_p12 }
 0x108   :  { %3459 = shalt.err (!%p3456_p0)
}
 0x109   :  { %s3460_s9 = scalar_lea.vmem %s214_s10, 2048  ;;  %p3465_p2 = scmp.lt.s32.totalorder %s214_s10, %s214_s10 }
 0x10a   :  { %p3461_p1 = scmp.ne.s32.totalorder %s214_s10, %s3460_s9  ;;  %p3466_p3 = scmp.lt.s32.totalorder %s3460_s9, %s3460_s9 }
 0x10c   :  { %p3467_p4 = por %p3466_p3, %p3465_p2 }
 0x10e   :  { %p3468_p5 = pnand %p3467_p4, %p3461_p1 }
 0x110   :  { %3471 = shalt.err (!%p3468_p5)
}
 0x111   :  { %219 = dma.hbm_to_vmem [thread:$0]  %s4075_s24, 2048, %s214_s10, [#allocation21], %s3540_s28, %s3540_s28, %s3541_s4  }
 0x112   :  { %3516 = dma.done.wait [#allocation3], 128  }
 0x113   :  { %3517 = vsyncadd [#allocation3], 4294967168 }
 0x114   :  { %3518 = dma.done.wait [#allocation6], 6144  }
 0x115   :  { %3519 = vsyncadd [#allocation6], 4294961152 }
 0x116   :  { %3520 = dma.done.wait [#allocation9], 6144  }
 0x117   :  { %3521 = vsyncadd [#allocation9], 4294961152 }
 0x118   :  { %3522 = dma.done.wait [#allocation12], 2048  }
 0x119   :  { %3523 = vsyncadd [#allocation12], 4294965248 }
 0x11a   :  { %3524 = dma.done.wait [#allocation15], 2048  }
 0x11b   :  { %3525 = vsyncadd [#allocation15], 4294965248 }
 0x11c   :  { %3526 = dma.done.wait [#allocation18], 6144  }
 0x11d   :  { %3527 = vsyncadd [#allocation18], 4294961152 }
 0x11e   :  { %3528 = dma.done.wait [#allocation21], 6144  }
 0x11f   :  { %3529 = vsyncadd [#allocation21], 4294961152  ;;  %v3551_v0 = vmov 0   ;;  %v2881_v1 = vld [vmem:[#allocation5 + $0x4] ss:$8 sps:$4 sm:$0xff]   ;;  %v262_v26 = vld [vmem:[#allocation2] sm:$0xff] }
 0x120   :  { %404 = vmatprep.mubr.bf16.mxu0 %v3551_v0  ;;  %v2883_v2 = vld [vmem:[#allocation5] ss:$8 sps:$4 sm:$0xff]   ;;  %372 = vmatprep.subr.bf16.mxu0 %v2881_v1  ;;  %v2884_v3 = vld [vmem:[#allocation5 + $0x14] ss:$8 sps:$4 sm:$0xff]   ;;  %v2886_v4 = vld [vmem:[#allocation5 + $0x10] ss:$8 sps:$4 sm:$0xff]   ;;  %v3924_v31 = vpack.c.bf16 %v262_v26, %v262_v26 }
 0x121   :  { %373 = vmatpush1.bf16.msra.mxu0 %v2883_v2  ;;  %v2887_v5 = vld [vmem:[#allocation5 + $0x24] ss:$8 sps:$4 sm:$0xff]   ;;  %v2889_v6 = vld [vmem:[#allocation5 + $0x20] ss:$8 sps:$4 sm:$0xff]   ;;  %v2890_v7 = vld [vmem:[#allocation5 + $0x34] ss:$8 sps:$4 sm:$0xff]  }
 0x122   :  { %374 = vmatprep.subr.bf16.mxu0 %v2884_v3  ;;  %v2892_v8 = vld [vmem:[#allocation5 + $0x30] ss:$8 sps:$4 sm:$0xff]   ;;  %v2893_v9 = vld [vmem:[#allocation5 + $0x44] ss:$8 sps:$4 sm:$0xff]   ;;  %v2907_v11 = vld [vmem:[#allocation7] ss:$8 sps:$4 sm:$0xff]  }
 0x123   :  { %v2905_v10 = vld [vmem:[#allocation7 + $0x4] ss:$8 sps:$4 sm:$0xff]   ;;  %v2908_v12 = vld [vmem:[#allocation7 + $0x14] ss:$8 sps:$4 sm:$0xff]   ;;  %v2895_v13 = vld [vmem:[#allocation5 + $0x40] ss:$8 sps:$4 sm:$0xff]  }
 0x124   :  { %621 = vmatprep.subr.bf16.mxu1 %v2905_v10  ;;  %v2910_v14 = vld [vmem:[#allocation7 + $0x10] ss:$8 sps:$4 sm:$0xff]   ;;  %v2911_v15 = vld [vmem:[#allocation7 + $0x24] ss:$8 sps:$4 sm:$0xff]   ;;  %v2896_v16 = vld [vmem:[#allocation5 + $0x54] ss:$8 sps:$4 sm:$0xff]  }
 0x125   :  { %375 = vmatpush1.bf16.msra.mxu0 %v2886_v4  ;;  %622 = vmatpush1.bf16.msra.mxu1 %v2907_v11  ;;  %v2898_v17 = vld [vmem:[#allocation5 + $0x50] ss:$8 sps:$4 sm:$0xff]   ;;  %v2913_v18 = vld [vmem:[#allocation7 + $0x20] ss:$8 sps:$4 sm:$0xff]   ;;  %v2914_v19 = vld [vmem:[#allocation7 + $0x34] ss:$8 sps:$4 sm:$0xff]  }
 0x126   :  { %376 = vmatprep.subr.bf16.mxu0 %v2887_v5  ;;  %623 = vmatprep.subr.bf16.mxu1 %v2908_v12  ;;  %v2899_v20 = vld [vmem:[#allocation5 + $0x64] ss:$8 sps:$4 sm:$0xff]   ;;  %v2901_v21 = vld [vmem:[#allocation5 + $0x60] ss:$8 sps:$4 sm:$0xff]   ;;  %v2916_v22 = vld [vmem:[#allocation7 + $0x30] ss:$8 sps:$4 sm:$0xff]  }
 0x127   :  { %v2917_v23 = vld [vmem:[#allocation7 + $0x44] ss:$8 sps:$4 sm:$0xff]   ;;  %v2902_v24 = vld [vmem:[#allocation5 + $0x74] ss:$8 sps:$4 sm:$0xff]   ;;  %v2904_v25 = vld [vmem:[#allocation5 + $0x70] ss:$8 sps:$4 sm:$0xff]  }
 0x128   :  { %v2919_v27 = vld [vmem:[#allocation7 + $0x40] ss:$8 sps:$4 sm:$0xff]   ;;  %v2920_v28 = vld [vmem:[#allocation7 + $0x54] ss:$8 sps:$4 sm:$0xff]   ;;  %v2922_v29 = vld [vmem:[#allocation7 + $0x50] ss:$8 sps:$4 sm:$0xff]  }
 0x129   :  { %377 = vmatpush1.bf16.msra.mxu0 %v2889_v6  ;;  %624 = vmatpush1.bf16.msra.mxu1 %v2910_v14  ;;  %v2923_v30 = vld [vmem:[#allocation7 + $0x64] ss:$8 sps:$4 sm:$0xff]   ;;  %v2925_v32 = vld [vmem:[#allocation7 + $0x60] ss:$8 sps:$4 sm:$0xff]   ;;  %v2926_v33 = vld [vmem:[#allocation7 + $0x74] ss:$8 sps:$4 sm:$0xff]  }
 0x12a   :  { %378 = vmatprep.subr.bf16.mxu0 %v2890_v7  ;;  %625 = vmatprep.subr.bf16.mxu1 %v2911_v15  ;;  %v2928_v34 = vld [vmem:[#allocation7 + $0x70] ss:$8 sps:$4 sm:$0xff]   ;;  %v2929_v35 = vld [vmem:[#allocation7 + $0x84] ss:$8 sps:$4 sm:$0xff]   ;;  %v2931_v36 = vld [vmem:[#allocation7 + $0x80] ss:$8 sps:$4 sm:$0xff]  }
 0x12b   :  { %v2932_v37 = vld [vmem:[#allocation7 + $0x94] ss:$8 sps:$4 sm:$0xff]   ;;  %v2934_v38 = vld [vmem:[#allocation7 + $0x90] ss:$8 sps:$4 sm:$0xff]   ;;  %v2935_v39 = vld [vmem:[#allocation7 + $0xa4] ss:$8 sps:$4 sm:$0xff]  }
 0x12c   :  { %v2937_v40 = vld [vmem:[#allocation7 + $0xa0] ss:$8 sps:$4 sm:$0xff]   ;;  %v2938_v41 = vld [vmem:[#allocation7 + $0xb4] ss:$8 sps:$4 sm:$0xff]   ;;  %v2940_v42 = vld [vmem:[#allocation7 + $0xb0] ss:$8 sps:$4 sm:$0xff]  }
 0x12d   :  { %379 = vmatpush1.bf16.msra.mxu0 %v2892_v8  ;;  %626 = vmatpush1.bf16.msra.mxu1 %v2913_v18  ;;  %v2941_v43 = vld [vmem:[#allocation7 + $0xc4] ss:$8 sps:$4 sm:$0xff]   ;;  %v2943_v44 = vld [vmem:[#allocation7 + $0xc0] ss:$8 sps:$4 sm:$0xff]   ;;  %v2944_v45 = vld [vmem:[#allocation7 + $0xd4] ss:$8 sps:$4 sm:$0xff]  }
 0x12e   :  { %380 = vmatprep.subr.bf16.mxu0 %v2893_v9  ;;  %627 = vmatprep.subr.bf16.mxu1 %v2914_v19  ;;  %v2946_v46 = vld [vmem:[#allocation7 + $0xd0] ss:$8 sps:$4 sm:$0xff]   ;;  %v2947_v47 = vld [vmem:[#allocation7 + $0xe4] ss:$8 sps:$4 sm:$0xff]   ;;  %v2949_v48 = vld [vmem:[#allocation7 + $0xe0] ss:$8 sps:$4 sm:$0xff]  }
 0x12f   :  { %v2950_v49 = vld [vmem:[#allocation7 + $0xf4] ss:$8 sps:$4 sm:$0xff]   ;;  %v2952_v50 = vld [vmem:[#allocation7 + $0xf0] ss:$8 sps:$4 sm:$0xff]   ;;  %v2953_v51 = vld [vmem:[#allocation8] ss:$8 sps:$4 sm:$0xff]  }
 0x130   :  { %v2955_v52 = vld [vmem:[#allocation8 + $0x4] ss:$8 sps:$4 sm:$0xff]   ;;  %v2958_v53 = vld [vmem:[#allocation8 + $0x14] ss:$8 sps:$4 sm:$0xff]   ;;  %v2956_v54 = vld [vmem:[#allocation8 + $0x10] ss:$8 sps:$4 sm:$0xff]  }
 0x131   :  { %381 = vmatpush1.bf16.msra.mxu0 %v2895_v13  ;;  %628 = vmatpush1.bf16.msra.mxu1 %v2916_v22  ;;  %v2961_v55 = vld [vmem:[#allocation8 + $0x24] ss:$8 sps:$4 sm:$0xff]   ;;  %v2959_v56 = vld [vmem:[#allocation8 + $0x20] ss:$8 sps:$4 sm:$0xff]   ;;  %v2964_v57 = vld [vmem:[#allocation8 + $0x34] ss:$8 sps:$4 sm:$0xff]  }
 0x132   :  { %382 = vmatprep.subr.bf16.mxu0 %v2896_v16  ;;  %629 = vmatprep.subr.bf16.mxu1 %v2917_v23  ;;  %v2962_v58 = vld [vmem:[#allocation8 + $0x30] ss:$8 sps:$4 sm:$0xff]   ;;  %v2967_v59 = vld [vmem:[#allocation8 + $0x44] ss:$8 sps:$4 sm:$0xff]   ;;  %v2965_v60 = vld [vmem:[#allocation8 + $0x40] ss:$8 sps:$4 sm:$0xff]   ;;  %v282_v16 = vlaneseq }
 0x133   :  { %v2970_v61 = vld [vmem:[#allocation8 + $0x54] ss:$8 sps:$4 sm:$0xff]   ;;  %v2968_v62 = vld [vmem:[#allocation8 + $0x50] ss:$8 sps:$4 sm:$0xff]   ;;  %v2973_v63 = vld [vmem:[#allocation8 + $0x64] ss:$8 sps:$4 sm:$0xff]  }
 0x134   :  { %v2971_v1 = vld [vmem:[#allocation8 + $0x60] ss:$8 sps:$4 sm:$0xff]   ;;  %v2976_v2 = vld [vmem:[#allocation8 + $0x74] ss:$8 sps:$4 sm:$0xff]   ;;  %v2974_v3 = vld [vmem:[#allocation8 + $0x70] ss:$8 sps:$4 sm:$0xff]  }
 0x135   :  { %383 = vmatpush1.bf16.msra.mxu0 %v2898_v17  ;;  %630 = vmatpush1.bf16.msra.mxu1 %v2919_v27  ;;  %v2979_v4 = vld [vmem:[#allocation8 + $0x84] ss:$8 sps:$4 sm:$0xff]   ;;  %v2977_v5 = vld [vmem:[#allocation8 + $0x80] ss:$8 sps:$4 sm:$0xff]   ;;  %v2982_v6 = vld [vmem:[#allocation8 + $0x94] ss:$8 sps:$4 sm:$0xff]  }
 0x136   :  { %384 = vmatprep.subr.bf16.mxu0 %v2899_v20  ;;  %631 = vmatprep.subr.bf16.mxu1 %v2920_v28  ;;  %v2980_v7 = vld [vmem:[#allocation8 + $0x90] ss:$8 sps:$4 sm:$0xff]   ;;  %v2985_v8 = vld [vmem:[#allocation8 + $0xa4] ss:$8 sps:$4 sm:$0xff]   ;;  %v2983_v9 = vld [vmem:[#allocation8 + $0xa0] ss:$8 sps:$4 sm:$0xff]  }
 0x137   :  { %v2988_v10 = vld [vmem:[#allocation8 + $0xb4] ss:$8 sps:$4 sm:$0xff]   ;;  %v2986_v11 = vld [vmem:[#allocation8 + $0xb0] ss:$8 sps:$4 sm:$0xff]   ;;  %v2991_v12 = vld [vmem:[#allocation8 + $0xc4] ss:$8 sps:$4 sm:$0xff]  }
 0x138   :  { %v2989_v13 = vld [vmem:[#allocation8 + $0xc0] ss:$8 sps:$4 sm:$0xff]   ;;  %v2994_v14 = vld [vmem:[#allocation8 + $0xd4] ss:$8 sps:$4 sm:$0xff]   ;;  %v2992_v15 = vld [vmem:[#allocation8 + $0xd0] ss:$8 sps:$4 sm:$0xff]  }
 0x139   :  { %385 = vmatpush1.bf16.msra.mxu0 %v2901_v21  ;;  %632 = vmatpush1.bf16.msra.mxu1 %v2922_v29  ;;  %v283_v17 = vshrl.u32 %v282_v16, 7  ;;  %s4110_s28 = sld [smem:[#allocation37_spill]]  ;;  %s4111_s2 = sld [smem:[#allocation39_spill]]  ;;  %vm3553_vm0 = vmmov 0   ;;  %vm1342_vm1 = vcmask 130048  }
 0x13a   :  { %386 = vmatprep.subr.bf16.mxu0 %v2902_v24  ;;  %633 = vmatprep.subr.bf16.mxu1 %v2923_v30  ;;  %s4112_s1 = sld [smem:[#allocation41_spill]]  ;;  %s4113_s26 = sld [smem:[#allocation43_spill]] }
 0x13b   :  { %v3927_v18 = vsub.s32 0, %v283_v17  ;;  %v3932_v20 = vsub.s32 1, %v283_v17  ;;  %s4114_s27 = sld [smem:[#allocation45_spill]]  ;;  %s3554_s6 = smov [#allocation24]  }
 0x13c   :  { %s2440_s24 = sshll.u32 %s3554_s6, 4  ;;  %s2441_s24 = int_to_ptr.vmem [resolvable:$true] %s2440_s24 }
 0x13d   :  { %387 = vmatpush1.bf16.msra.mxu0 %v2904_v25  ;;  %634 = vmatpush1.bf16.msra.mxu1 %v2925_v32  ;;  %p3477_p7 = scmp.lt.s32.totalorder %s2441_s24, %s2441_s24 }
 0x13e   :  { %635 = vmatprep.subr.bf16.mxu1 %v2926_v33  ;;  %870 = vmatprep.subr.bf16.mxu0 %v2955_v52 }
 0x13f   :  { %v280_v19 = vld [vmem:[%s4110_s28] sm:$0x3] }
 0x140   :  { %405 = vmatmul.mubr.bf16.vlgmr.msra.gmra.mrb[0].mxu0 %v3924_v31  ;;  %v285_v21 = vrot.slane %v280_v19, %v3927_v18  ;;  %v289_v22 = vrot.slane %v280_v19, %v3932_v20 }
 0x141   :  { %636 = vmatpush1.bf16.msra.mxu1 %v2928_v34  ;;  %871 = vmatpush1.bf16.msra.mxu0 %v2953_v51  ;;  %v2997_v34 = vld [vmem:[#allocation8 + $0xe4] ss:$8 sps:$4 sm:$0xff]  }
 0x142   :  { %637 = vmatprep.subr.bf16.mxu1 %v2929_v35  ;;  %872 = vmatprep.subr.bf16.mxu0 %v2958_v53  ;;  %v2995_v35 = vld [vmem:[#allocation8 + $0xe0] ss:$8 sps:$4 sm:$0xff]  }
 0x145   :  { %638 = vmatpush1.bf16.msra.mxu1 %v2931_v36  ;;  %873 = vmatpush1.bf16.msra.mxu0 %v2956_v54  ;;  %v3000_v36 = vld [vmem:[#allocation8 + $0xf4] ss:$8 sps:$4 sm:$0xff]  }
 0x146   :  { %639 = vmatprep.subr.bf16.mxu1 %v2932_v37  ;;  %874 = vmatprep.subr.bf16.mxu0 %v2961_v55  ;;  %v2998_v37 = vld [vmem:[#allocation8 + $0xf0] ss:$8 sps:$4 sm:$0xff]  }
 0x149   :  { %640 = vmatpush1.bf16.msra.mxu1 %v2934_v38  ;;  %875 = vmatpush1.bf16.msra.mxu0 %v2959_v56  ;;  %v3001_v38 = vld [vmem:[#allocation10 + $0x40] sm:$0xff]  }
 0x14a   :  { %641 = vmatprep.subr.bf16.mxu1 %v2935_v39  ;;  %876 = vmatprep.subr.bf16.mxu0 %v2964_v57  ;;  %v3002_v39 = vld [vmem:[#allocation10] sm:$0xff]  }
 0x14d   :  { %642 = vmatpush1.bf16.msra.mxu1 %v2937_v40  ;;  %877 = vmatpush1.bf16.msra.mxu0 %v2962_v58  ;;  %v3003_v40 = vld [vmem:[#allocation10 + $0x48] sm:$0xff]  }
 0x14e   :  { %643 = vmatprep.subr.bf16.mxu1 %v2938_v41  ;;  %878 = vmatprep.subr.bf16.mxu0 %v2967_v59  ;;  %v3004_v41 = vld [vmem:[#allocation10 + $0x8] sm:$0xff]  }
 0x151   :  { %644 = vmatpush1.bf16.msra.mxu1 %v2940_v42  ;;  %879 = vmatpush1.bf16.msra.mxu0 %v2965_v60  ;;  %v3005_v42 = vld [vmem:[#allocation10 + $0x50] sm:$0xff]  }
 0x152   :  { %645 = vmatprep.subr.bf16.mxu1 %v2941_v43  ;;  %880 = vmatprep.subr.bf16.mxu0 %v2970_v61  ;;  %v3006_v43 = vld [vmem:[#allocation10 + $0x10] sm:$0xff]  }
 0x155   :  { %646 = vmatpush1.bf16.msra.mxu1 %v2943_v44  ;;  %881 = vmatpush1.bf16.msra.mxu0 %v2968_v62  ;;  %v3007_v44 = vld [vmem:[#allocation10 + $0x58] sm:$0xff]  }
 0x156   :  { %647 = vmatprep.subr.bf16.mxu1 %v2944_v45  ;;  %882 = vmatprep.subr.bf16.mxu0 %v2973_v63  ;;  %v3008_v45 = vld [vmem:[#allocation10 + $0x18] sm:$0xff]   ;;  %v3013_v63 = vld [vmem:[#allocation10 + $0x70] sm:$0xff]  }
 0x159   :  { %648 = vmatpush1.bf16.msra.mxu1 %v2946_v46  ;;  %883 = vmatpush1.bf16.msra.mxu0 %v2971_v1  ;;  %v3009_v46 = vld [vmem:[#allocation10 + $0x60] sm:$0xff]   ;;  %v3014_v1 = vld [vmem:[#allocation10 + $0x30] sm:$0xff]  }
 0x15a   :  { %649 = vmatprep.subr.bf16.mxu1 %v2947_v47  ;;  %884 = vmatprep.subr.bf16.mxu0 %v2976_v2  ;;  %v3010_v47 = vld [vmem:[#allocation10 + $0x20] sm:$0xff]   ;;  %v3015_v2 = vld [vmem:[#allocation10 + $0x78] sm:$0xff]  }
 0x15d   :  { %650 = vmatpush1.bf16.msra.mxu1 %v2949_v48  ;;  %885 = vmatpush1.bf16.msra.mxu0 %v2974_v3  ;;  %v3011_v48 = vld [vmem:[#allocation10 + $0x68] sm:$0xff]   ;;  %v3016_v3 = vld [vmem:[#allocation10 + $0x38] sm:$0xff]  }
 0x15e   :  { %651 = vmatprep.subr.bf16.mxu1 %v2950_v49  ;;  %886 = vmatprep.subr.bf16.mxu0 %v2979_v4  ;;  %v3012_v49 = vld [vmem:[#allocation10 + $0x28] sm:$0xff]   ;;  %v3017_v4 = vld [vmem:[#allocation11] sm:$0xff]  }
 0x161   :  { %652 = vmatpush1.bf16.msra.mxu1 %v2952_v50  ;;  %887 = vmatpush1.bf16.msra.mxu0 %v2977_v5  ;;  %v449_v50 = vld [vmem:[%s4111_s2] sm:$0x3]  ;;  %v3552_v5 = vmov 0.0  }
 0x162   :  { %888 = vmatprep.subr.bf16.mxu0 %v2982_v6  ;;  %2691 = vmatprep.subr.bf16.mxu1 %v3001_v38  ;;  %v454_v51 = vrot.slane %v449_v50, %v3927_v18  ;;  %v458_v52 = vrot.slane %v449_v50, %v3932_v20  ;;  %v3018_v6 = vld [vmem:[#allocation11 + $0x8] sm:$0xff]  }
 0x165   :  { %889 = vmatpush1.bf16.msra.mxu0 %v2980_v7  ;;  %v3019_v7 = vld [vmem:[#allocation11 + $0x10] sm:$0xff]  }
 0x166   :  { %890 = vmatprep.subr.bf16.mxu0 %v2985_v8  ;;  %v3020_v8 = vld [vmem:[#allocation11 + $0x18] sm:$0xff]  }
 0x169   :  { %891 = vmatpush1.bf16.msra.mxu0 %v2983_v9  ;;  %v3021_v9 = vld [vmem:[#allocation11 + $0x20] sm:$0xff]  }
 0x16a   :  { %892 = vmatprep.subr.bf16.mxu0 %v2988_v10  ;;  %v3022_v10 = vld [vmem:[#allocation11 + $0x28] sm:$0xff]  }
 0x16d   :  { %893 = vmatpush1.bf16.msra.mxu0 %v2986_v11  ;;  %v698_v11 = vld [vmem:[%s4112_s1] sm:$0x3] }
 0x16e   :  { %894 = vmatprep.subr.bf16.mxu0 %v2991_v12  ;;  %v703_v12 = vrot.slane %v698_v11, %v3927_v18 }
 0x171   :  { %895 = vmatpush1.bf16.msra.mxu0 %v2989_v13  ;;  %v707_v13 = vrot.slane %v698_v11, %v3932_v20 }
 0x172   :  { %896 = vmatprep.subr.bf16.mxu0 %v2994_v14 }
 0x175   :  { %897 = vmatpush1.bf16.msra.mxu0 %v2992_v15 }
 0x176   :  { %898 = vmatprep.subr.bf16.mxu0 %v2997_v34  ;;  %v3030_v34 = vld [vmem:[#allocation13 + $0x28] sm:$0xff]  }
 0x179   :  { %899 = vmatpush1.bf16.msra.mxu0 %v2995_v35 }
 0x17a   :  { %900 = vmatprep.subr.bf16.mxu0 %v3000_v36  ;;  %v2539_v36 = vld [vmem:[%s4113_s26] ss:$0 sm:$0xff] }
 0x17d   :  { %901 = vmatpush1.bf16.msra.mxu0 %v2998_v37 }
 0x17e   :  { %2773 = vmatprep.subr.bf16.mxu0 %v3552_v5 }
 0x213   :  { %v406_v23 = vpop.f32.mrb[0].mxu0 }
 0x214   :  { %v407_v24 = vadd.f32 %v406_v23, %v285_v21  ;;  %v408_v25 = vpop.f32.mrb[1].mxu0 }
 0x215   :  { %v409_v26 = vadd.f32 %v408_v25, %v289_v22  ;;  %v410_v27 = vpop.f32.mrb[2].mxu0 }
 0x216   :  { %v413_v28 = vmax.f32 %v407_v24, 0.0  ;;  %v411_v29 = vpop.f32.mrb[3].mxu0  ;;  %v3024_v27 = vld [vmem:[#allocation11 + $0x38] sm:$0xff]  }
 0x217   :  { %v414_v30 = vmax.f32 %v409_v26, 0.0  ;;  %v3023_v26 = vld [vmem:[#allocation11 + $0x30] sm:$0xff]   ;;  %v3026_v29 = vld [vmem:[#allocation13 + $0x8] sm:$0xff]  }
 0x218   :  { %v415_v33 = vpack.c.bf16 %v413_v28, %v413_v28  ;;  %v3025_v28 = vld [vmem:[#allocation13] sm:$0xff]  }
 0x219   :  { %v416_v32 = vpack.c.bf16 %v414_v30, %v414_v30  ;;  %v3027_v30 = vld [vmem:[#allocation13 + $0x10] sm:$0xff]  }
 0x21b   :  { %653 = vmatprep.mubr.bf16.mxu1 %v416_v32  ;;  %v3028_v32 = vld [vmem:[#allocation13 + $0x18] sm:$0xff]  }
 0x21c   :  { %654 = vmatmul.mubr.bf16.vlgmr.msra.gmra.mrb[0].mxu1 %v415_v33  ;;  %v3029_v33 = vld [vmem:[#allocation13 + $0x20] sm:$0xff]  }
 0x21d   :  { %2692 = vmatpush3.bf16.msra.mxu1 %v3002_v39 }
 0x21e   :  { %2693 = vmatprep.subr.bf16.mxu1 %v3003_v40 }
 0x221   :  { %2694 = vmatpush3.bf16.msra.mxu1 %v3004_v41 }
 0x222   :  { %2695 = vmatprep.subr.bf16.mxu1 %v3005_v42 }
 0x225   :  { %2696 = vmatpush3.bf16.msra.mxu1 %v3006_v43 }
 0x226   :  { %2697 = vmatprep.subr.bf16.mxu1 %v3007_v44  ;;  %v3031_v44 = vld [vmem:[#allocation13 + $0x30] sm:$0xff]  }
 0x229   :  { %2698 = vmatpush3.bf16.msra.mxu1 %v3008_v45  ;;  %v3032_v45 = vld [vmem:[#allocation13 + $0x38] sm:$0xff]  }
 0x22a   :  { %2699 = vmatprep.subr.bf16.mxu1 %v3009_v46  ;;  %v3039_v46 = vld [vmem:[%s4065_s14] sm:$0xff]  }
 0x22d   :  { %2700 = vmatpush3.bf16.msra.mxu1 %v3010_v47  ;;  %v2556_v47 = vld [vmem:[%s4114_s27] ss:$0 sm:$0xff] }
 0x22e   :  { %2701 = vmatprep.subr.bf16.mxu1 %v3011_v48 }
 0x231   :  { %2702 = vmatpush3.bf16.msra.mxu1 %v3012_v49 }
 0x232   :  { %2703 = vmatprep.subr.bf16.mxu1 %v3013_v63  ;;  %v3042_v63 = vld [vmem:[#allocation16] sm:$0xff]  }
 0x235   :  { %2704 = vmatpush3.bf16.msra.mxu1 %v3014_v1  ;;  %v3043_v1 = vld [vmem:[#allocation16 + $0x8] sm:$0xff]  }
 0x236   :  { %2705 = vmatprep.subr.bf16.mxu1 %v3015_v2  ;;  %v3044_v2 = vld [vmem:[#allocation16 + $0x10] sm:$0xff]  }
 0x239   :  { %2706 = vmatpush3.bf16.msra.mxu1 %v3016_v3  ;;  %v3045_v3 = vld [vmem:[#allocation16 + $0x18] sm:$0xff]  }
 0x23a   :  { %2793 = vmatprep.subr.bf16.mxu1 %v3552_v5 }
 0x2ef   :  { %v655_v53 = vpop.f32.mrb[0].mxu1 }
 0x2f0   :  { %v656_v54 = vadd.f32 %v655_v53, %v454_v51  ;;  %v657_v55 = vpop.f32.mrb[1].mxu1 }
 0x2f1   :  { %v658_v56 = vadd.f32 %v657_v55, %v458_v52  ;;  %v659_v57 = vpop.f32.mrb[2].mxu1 }
 0x2f2   :  { %v662_v58 = vmax.f32 %v656_v54, 0.0  ;;  %v660_v59 = vpop.f32.mrb[3].mxu1  ;;  %v3033_v54 = vld [vmem:[#allocation14] sm:$0xff]   ;;  %v3035_v57 = vld [vmem:[#allocation14 + $0x10] sm:$0xff]  }
 0x2f3   :  { %v663_v60 = vmax.f32 %v658_v56, 0.0  ;;  %v3034_v56 = vld [vmem:[#allocation14 + $0x8] sm:$0xff]   ;;  %v3037_v59 = vld [vmem:[#allocation14 + $0x20] sm:$0xff]  }
 0x2f4   :  { %v664_v62 = vpack.c.bf16 %v662_v58, %v662_v58  ;;  %v3036_v58 = vld [vmem:[#allocation14 + $0x18] sm:$0xff]  }
 0x2f5   :  { %v665_v61 = vpack.c.bf16 %v663_v60, %v663_v60  ;;  %v3038_v60 = vld [vmem:[#allocation14 + $0x28] sm:$0xff]  }
 0x2f7   :  { %902 = vmatprep.mubr.bf16.mxu0 %v665_v61  ;;  %v3040_v61 = vld [vmem:[#allocation14 + $0x30] sm:$0xff]  }
 0x2f8   :  { %903 = vmatmul.mubr.bf16.vlgmr.msra.gmra.mrb[4].mxu0 %v664_v62  ;;  %v3041_v62 = vld [vmem:[#allocation14 + $0x38] sm:$0xff]  }
 0x2f9   :  { %2774 = vmatpush3.bf16.msra.mxu0 %v3017_v4  ;;  %2789 = vmatprep.mubr.msk.bf16.mxu0 %vm3553_vm0, %v3552_v5  ;;  %v3046_v4 = vld [vmem:[#allocation16 + $0x20] sm:$0xff]  }
 0x2fa   :  { %2775 = vmatprep.subr.bf16.mxu0 %v3552_v5 }
 0x2fd   :  { %2776 = vmatpush3.bf16.msra.mxu0 %v3018_v6  ;;  %v2565_v6 = vld [vmem:[%s4063_s12] ss:$0 sm:$0xff] }
 0x2fe   :  { %2777 = vmatprep.subr.bf16.mxu0 %v3552_v5 }
 0x301   :  { %2778 = vmatpush3.bf16.msra.mxu0 %v3019_v7 }
 0x302   :  { %2779 = vmatprep.subr.bf16.mxu0 %v3552_v5 }
 0x305   :  { %2780 = vmatpush3.bf16.msra.mxu0 %v3020_v8 }
 0x306   :  { %2781 = vmatprep.subr.bf16.mxu0 %v3552_v5 }
 0x309   :  { %2782 = vmatpush3.bf16.msra.mxu0 %v3021_v9 }
 0x30a   :  { %2783 = vmatprep.subr.bf16.mxu0 %v3552_v5 }
 0x30d   :  { %2784 = vmatpush3.bf16.msra.mxu0 %v3022_v10 }
 0x30e   :  { %2785 = vmatprep.subr.bf16.mxu0 %v3552_v5 }
 0x311   :  { %2786 = vmatpush3.bf16.msra.mxu0 %v3023_v26  ;;  %v3061_v26 = vld [vmem:[#allocation17 + $0x34] ss:$8 sps:$4 sm:$0xff]  }
 0x312   :  { %2787 = vmatprep.subr.bf16.mxu0 %v3552_v5 }
 0x315   :  { %2788 = vmatpush3.bf16.msra.mxu0 %v3024_v27  ;;  %v3059_v27 = vld [vmem:[#allocation17 + $0x30] ss:$8 sps:$4 sm:$0xff]  }
 0x316   :  { %2813 = vmatprep.subr.bf16.mxu0 %v3552_v5 }
 0x3cb   :  { %v904_v14 = vpop.f32.mrb[4].mxu0 }
 0x3cc   :  { %v905_v15 = vadd.f32 %v904_v14, %v703_v12  ;;  %v906_v16 = vpop.f32.mrb[5].mxu0 }
 0x3cd   :  { %v907_v17 = vadd.f32 %v906_v16, %v707_v13  ;;  %v908_v19 = vpop.f32.mrb[6].mxu0 }
 0x3ce   :  { %v911_v21 = vmax.f32 %v905_v15, 0.0  ;;  %v909_v22 = vpop.f32.mrb[7].mxu0  ;;  %v3049_v19 = vld [vmem:[#allocation16 + $0x38] sm:$0xff]  }
 0x3cf   :  { %v912_v23 = vmax.f32 %v907_v17, 0.0  ;;  %v3048_v17 = vld [vmem:[#allocation16 + $0x30] sm:$0xff]   ;;  %v3052_v22 = vld [vmem:[#allocation17 + $0x4] ss:$8 sps:$4 sm:$0xff]  }
 0x3d0   :  { %v913_v25 = vpack.c.bf16 %v911_v21, %v911_v21  ;;  %v3050_v21 = vld [vmem:[#allocation17] ss:$8 sps:$4 sm:$0xff]  }
 0x3d1   :  { %v914_v24 = vpack.c.bf16 %v912_v23, %v912_v23  ;;  %v3055_v23 = vld [vmem:[#allocation17 + $0x14] ss:$8 sps:$4 sm:$0xff]  }
 0x3d3   :  { %1082 = vmatprep.mubr.bf16.mxu1 %v914_v24  ;;  %v3053_v24 = vld [vmem:[#allocation17 + $0x10] ss:$8 sps:$4 sm:$0xff]  }
 0x3d4   :  { %1083 = vmatmul.mubr.bf16.vlgmr.msra.gmra.mrb[4].mxu1 %v913_v25  ;;  %v3058_v25 = vld [vmem:[#allocation17 + $0x24] ss:$8 sps:$4 sm:$0xff]  }
 0x3d5   :  { %2809 = vmatprep.mubr.msk.bf16.mxu1 %vm3553_vm0, %v3552_v5  ;;  %2794 = vmatpush3.bf16.msra.mxu1 %v3025_v28  ;;  %v3064_v28 = vld [vmem:[#allocation17 + $0x44] ss:$8 sps:$4 sm:$0xff]  }
 0x3d6   :  { %2795 = vmatprep.subr.bf16.mxu1 %v3552_v5 }
 0x3d9   :  { %2796 = vmatpush3.bf16.msra.mxu1 %v3026_v29  ;;  %v3067_v29 = vld [vmem:[#allocation17 + $0x54] ss:$8 sps:$4 sm:$0xff]  }
 0x3da   :  { %2797 = vmatprep.subr.bf16.mxu1 %v3552_v5 }
 0x3dd   :  { %2798 = vmatpush3.bf16.msra.mxu1 %v3027_v30  ;;  %v3065_v30 = vld [vmem:[#allocation17 + $0x50] ss:$8 sps:$4 sm:$0xff]  }
 0x3de   :  { %2799 = vmatprep.subr.bf16.mxu1 %v3552_v5 }
 0x3e1   :  { %2800 = vmatpush3.bf16.msra.mxu1 %v3028_v32  ;;  %v3070_v32 = vld [vmem:[#allocation17 + $0x64] ss:$8 sps:$4 sm:$0xff]  }
 0x3e2   :  { %2801 = vmatprep.subr.bf16.mxu1 %v3552_v5 }
 0x3e5   :  { %2802 = vmatpush3.bf16.msra.mxu1 %v3029_v33  ;;  %v3068_v33 = vld [vmem:[#allocation17 + $0x60] ss:$8 sps:$4 sm:$0xff]  }
 0x3e6   :  { %2803 = vmatprep.subr.bf16.mxu1 %v3552_v5 }
 0x3e9   :  { %2804 = vmatpush3.bf16.msra.mxu1 %v3030_v34 }
 0x3ea   :  { %2805 = vmatprep.subr.bf16.mxu1 %v3552_v5 }
 0x3ed   :  { %2806 = vmatpush3.bf16.msra.mxu1 %v3031_v44  ;;  %v3071_v44 = vld [vmem:[#allocation17 + $0x70] ss:$8 sps:$4 sm:$0xff]  }
 0x3ee   :  { %2807 = vmatprep.subr.bf16.mxu1 %v3552_v5 }
 0x3f1   :  { %2808 = vmatpush3.bf16.msra.mxu1 %v3032_v45  ;;  %v3074_v45 = vld [vmem:[#allocation19] ss:$8 sps:$4 sm:$0xff]  }
 0x3f2   :  { %2819 = vmatprep.subr.bf16.mxu1 %v3552_v5 }
 0x4a7   :  { %v2707_v35 = vpop.f32.mrb[4].mxu1 }
 0x4a8   :  { %v2708_v37 = vpop.f32.mrb[5].mxu1 }
 0x4a9   :  { %v2709_v38 = vadd.f32 %v2708_v37, %v2707_v35  ;;  %v2710_v39 = vpop.f32.mrb[6].mxu1  ;;  %v2584_v35 = vld [vmem:[%s4066_s15] ss:$0 sm:$0xff] }
 0x4aa   :  { %v2711_v40 = vpop.f32.mrb[7].mxu1 }
 0x4ab   :  { %v1085_v41 = vadd.f32 %v2709_v38, %v2539_v36 }
 0x4ad   :  { %v1090_v42 = vmax.f32 %v1085_v41, 0.0 }
 0x4af   :  { %v1091_v43 = vpack.c.bf16 %v1090_v42, %v1090_v42 }
 0x4b1   :  { %2790 = vmatmul.mubr.bf16.vlgmr.msra.gmra.mrb[8].mxu0 %v1091_v43  ;;  %v3073_v43 = vld [vmem:[#allocation17 + $0x74] ss:$8 sps:$4 sm:$0xff]  }
 0x4b2   :  { %2815 = vmatprep.mubr.msk.bf16.mxu0 %vm3553_vm0, %v3552_v5  ;;  %2814 = vmatpush3.bf16.msra.mxu0 %v3039_v46  ;;  %v3076_v46 = vld [vmem:[#allocation19 + $0x4] ss:$8 sps:$4 sm:$0xff]  }
 0x4b3   :  { %2839 = vmatprep.subr.bf16.mxu0 %v3552_v5 }
 0x4b9   :  { %2816 = vmatmul.mubr.msk.bf16.vlgmr.msra.gmra.mrb[12].mxu0 %vm1342_vm1, %v3924_v31  ;;  %v3047_v31 = vld [vmem:[#allocation16 + $0x28] sm:$0xff]  }
 0x4ba   :  { %2855 = vmatprep.mubr.msk.bf16.mxu0 %vm3553_vm0, %v3552_v5  ;;  %2840 = vmatpush3.bf16.msra.mxu0 %v3042_v63  ;;  %v3103_v63 = vld [vmem:[#allocation19 + $0x94] ss:$8 sps:$4 sm:$0xff]  }
 0x4bb   :  { %2841 = vmatprep.subr.bf16.mxu0 %v3552_v5 }
 0x4be   :  { %2842 = vmatpush3.bf16.msra.mxu0 %v3043_v1  ;;  %v3101_v1 = vld [vmem:[#allocation19 + $0x90] ss:$8 sps:$4 sm:$0xff]  }
 0x4bf   :  { %2843 = vmatprep.subr.bf16.mxu0 %v3552_v5 }
 0x4c2   :  { %2844 = vmatpush3.bf16.msra.mxu0 %v3044_v2  ;;  %v3106_v2 = vld [vmem:[#allocation19 + $0xa4] ss:$8 sps:$4 sm:$0xff]  }
 0x4c3   :  { %2845 = vmatprep.subr.bf16.mxu0 %v3552_v5 }
 0x4c6   :  { %2846 = vmatpush3.bf16.msra.mxu0 %v3045_v3  ;;  %v3104_v3 = vld [vmem:[#allocation19 + $0xa0] ss:$8 sps:$4 sm:$0xff]  }
 0x4c7   :  { %2847 = vmatprep.subr.bf16.mxu0 %v3552_v5 }
 0x4ca   :  { %2848 = vmatpush3.bf16.msra.mxu0 %v3046_v4  ;;  %v3109_v4 = vld [vmem:[#allocation19 + $0xb4] ss:$8 sps:$4 sm:$0xff]  }
 0x4cb   :  { %2849 = vmatprep.subr.bf16.mxu0 %v3552_v5 }
 0x4ce   :  { %2850 = vmatpush3.bf16.msra.mxu0 %v3047_v31  ;;  %v3107_v31 = vld [vmem:[#allocation19 + $0xb0] ss:$8 sps:$4 sm:$0xff]  }
 0x4cf   :  { %2851 = vmatprep.subr.bf16.mxu0 %v3552_v5 }
 0x4d2   :  { %2852 = vmatpush3.bf16.msra.mxu0 %v3048_v17 }
 0x4d3   :  { %2853 = vmatprep.subr.bf16.mxu0 %v3552_v5 }
 0x4d6   :  { %2854 = vmatpush3.bf16.msra.mxu0 %v3049_v19  ;;  %v3118_v19 = vld [vmem:[#allocation19 + $0xe4] ss:$8 sps:$4 sm:$0xff]  }
 0x4d7   :  { %1954 = vmatprep.subr.bf16.mxu0 %v3076_v46  ;;  %v3155_v46 = vld [vmem:[#allocation20 + $0xb0] ss:$8 sps:$4 sm:$0xff]  }
 0x584   :  { %v1197_v48 = vpop.f32.mrb[8].mxu0 }
 0x585   :  { %v1198_v49 = vadd.f32 %v2556_v47, %v1197_v48  ;;  %v2791_v50 = vpop.f32.mrb[9].mxu0  ;;  %v3079_v47 = vld [vmem:[#allocation19 + $0x14] ss:$8 sps:$4 sm:$0xff]   ;;  %v3077_v48 = vld [vmem:[#allocation19 + $0x10] ss:$8 sps:$4 sm:$0xff]  }
 0x586   :  { %v1200_v51 = vpop.f32.mrb[10].mxu0  ;;  %v3080_v50 = vld [vmem:[#allocation19 + $0x20] ss:$8 sps:$4 sm:$0xff]  }
 0x587   :  { %v1203_v52 = vmax.f32 %v1198_v49, 0.0  ;;  %v2792_v53 = vpop.f32.mrb[11].mxu0  ;;  %v3082_v49 = vld [vmem:[#allocation19 + $0x24] ss:$8 sps:$4 sm:$0xff]   ;;  %v3085_v51 = vld [vmem:[#allocation19 + $0x34] ss:$8 sps:$4 sm:$0xff]  }
 0x588   :  { %v3088_v53 = vld [vmem:[#allocation19 + $0x44] ss:$8 sps:$4 sm:$0xff]  }
 0x589   :  { %v1204_v55 = vpack.c.bf16 %v1203_v52, %v1203_v52  ;;  %v3083_v52 = vld [vmem:[#allocation19 + $0x30] ss:$8 sps:$4 sm:$0xff]  }
 0x58b   :  { %2810 = vmatmul.mubr.bf16.vlgmr.msra.gmra.mrb[8].mxu1 %v1204_v55  ;;  %v3091_v55 = vld [vmem:[#allocation19 + $0x54] ss:$8 sps:$4 sm:$0xff]  }
 0x58c   :  { %2820 = vmatpush3.bf16.msra.mxu1 %v3033_v54  ;;  %2835 = vmatprep.mubr.msk.bf16.mxu1 %vm3553_vm0, %v3552_v5  ;;  %v1380_v13 = vpop.f32.mrb[12].mxu0  ;;  %v3086_v54 = vld [vmem:[#allocation19 + $0x40] ss:$8 sps:$4 sm:$0xff]  }
 0x58d   :  { %2821 = vmatprep.subr.bf16.mxu1 %v3552_v5  ;;  %v2817_v14 = vpop.f32.mrb[13].mxu0 }
 0x58e   :  { %v1383_v15 = vpop.f32.mrb[14].mxu0 }
 0x58f   :  { %v2818_v16 = vpop.f32.mrb[15].mxu0 }
 0x590   :  { %2822 = vmatpush3.bf16.msra.mxu1 %v3034_v56  ;;  %v3089_v56 = vld [vmem:[#allocation19 + $0x50] ss:$8 sps:$4 sm:$0xff]  }
 0x591   :  { %2823 = vmatprep.subr.bf16.mxu1 %v3552_v5 }
 0x594   :  { %2824 = vmatpush3.bf16.msra.mxu1 %v3035_v57  ;;  %v3094_v57 = vld [vmem:[#allocation19 + $0x64] ss:$8 sps:$4 sm:$0xff]  }
 0x595   :  { %2825 = vmatprep.subr.bf16.mxu1 %v3552_v5 }
 0x598   :  { %2826 = vmatpush3.bf16.msra.mxu1 %v3036_v58  ;;  %v3092_v58 = vld [vmem:[#allocation19 + $0x60] ss:$8 sps:$4 sm:$0xff]  }
 0x599   :  { %2827 = vmatprep.subr.bf16.mxu1 %v3552_v5 }
 0x59c   :  { %2828 = vmatpush3.bf16.msra.mxu1 %v3037_v59  ;;  %v3097_v59 = vld [vmem:[#allocation19 + $0x74] ss:$8 sps:$4 sm:$0xff]  }
 0x59d   :  { %2829 = vmatprep.subr.bf16.mxu1 %v3552_v5 }
 0x5a0   :  { %2830 = vmatpush3.bf16.msra.mxu1 %v3038_v60  ;;  %v3095_v60 = vld [vmem:[#allocation19 + $0x70] ss:$8 sps:$4 sm:$0xff]  }
 0x5a1   :  { %2831 = vmatprep.subr.bf16.mxu1 %v3552_v5 }
 0x5a4   :  { %2832 = vmatpush3.bf16.msra.mxu1 %v3040_v61  ;;  %v3100_v61 = vld [vmem:[#allocation19 + $0x84] ss:$8 sps:$4 sm:$0xff]  }
 0x5a5   :  { %2833 = vmatprep.subr.bf16.mxu1 %v3552_v5  ;;  %v3062_v5 = vld [vmem:[#allocation17 + $0x40] ss:$8 sps:$4 sm:$0xff]  }
 0x5a8   :  { %2834 = vmatpush3.bf16.msra.mxu1 %v3041_v62  ;;  %v3098_v62 = vld [vmem:[#allocation19 + $0x80] ss:$8 sps:$4 sm:$0xff]  }
 0x5a9   :  { %1705 = vmatprep.subr.bf16.mxu1 %v3052_v22  ;;  %v3121_v22 = vld [vmem:[#allocation19 + $0xf4] ss:$8 sps:$4 sm:$0xff]  }
 0x65e   :  { %v1310_v7 = vpop.f32.mrb[8].mxu1 }
 0x65f   :  { %v1311_v8 = vadd.f32 %v2565_v6, %v1310_v7  ;;  %v2811_v9 = vpop.f32.mrb[9].mxu1  ;;  %v3112_v6 = vld [vmem:[#allocation19 + $0xc4] ss:$8 sps:$4 sm:$0xff]   ;;  %v3110_v7 = vld [vmem:[#allocation19 + $0xc0] ss:$8 sps:$4 sm:$0xff]  }
 0x660   :  { %v1313_v10 = vpop.f32.mrb[10].mxu1  ;;  %v3113_v9 = vld [vmem:[#allocation19 + $0xd0] ss:$8 sps:$4 sm:$0xff]  }
 0x661   :  { %v1317_v11 = vpack.c.bf16 %v1311_v8, %v1311_v8  ;;  %1316 = vst [vmem:[#allocation24] sm:$0xff] %v1311_v8  ;;  %v2812_v12 = vpop.f32.mrb[11].mxu1  ;;  %v3115_v8 = vld [vmem:[#allocation19 + $0xd4] ss:$8 sps:$4 sm:$0xff]   ;;  %v2585_v10 = vld [vmem:[%s4068_s17] ss:$0 sm:$0xff] }
 0x663   :  { %2836 = vmatmul.mubr.bf16.vlgmr.msra.gmra.mrb[12].mxu1 %v1317_v11 }
 0x664   :  { %1737 = vmatprep.mubr.bf16.mxu1 %v3551_v0  ;;  %1706 = vmatpush1.bf16.msra.mxu1 %v3050_v21  ;;  %v3056_v0 = vld [vmem:[#allocation17 + $0x20] ss:$8 sps:$4 sm:$0xff]  }
 0x665   :  { %1707 = vmatprep.subr.bf16.mxu1 %v3055_v23  ;;  %v3116_v21 = vld [vmem:[#allocation19 + $0xe0] ss:$8 sps:$4 sm:$0xff]   ;;  %v3119_v23 = vld [vmem:[#allocation19 + $0xf0] ss:$8 sps:$4 sm:$0xff]  }
 0x668   :  { %1708 = vmatpush1.bf16.msra.mxu1 %v3053_v24  ;;  %v3122_v24 = vld [vmem:[#allocation20] ss:$8 sps:$4 sm:$0xff]  }
 0x669   :  { %1709 = vmatprep.subr.bf16.mxu1 %v3058_v25  ;;  %v3124_v25 = vld [vmem:[#allocation20 + $0x4] ss:$8 sps:$4 sm:$0xff]  }
 0x66c   :  { %1710 = vmatpush1.bf16.msra.mxu1 %v3056_v0  ;;  %v3127_v0 = vld [vmem:[#allocation20 + $0x14] ss:$8 sps:$4 sm:$0xff]  }
 0x66d   :  { %1711 = vmatprep.subr.bf16.mxu1 %v3061_v26  ;;  %v3125_v26 = vld [vmem:[#allocation20 + $0x10] ss:$8 sps:$4 sm:$0xff]  }
 0x670   :  { %1712 = vmatpush1.bf16.msra.mxu1 %v3059_v27  ;;  %v3130_v27 = vld [vmem:[#allocation20 + $0x24] ss:$8 sps:$4 sm:$0xff]  }
 0x671   :  { %1713 = vmatprep.subr.bf16.mxu1 %v3064_v28  ;;  %v3128_v28 = vld [vmem:[#allocation20 + $0x20] ss:$8 sps:$4 sm:$0xff]  }
 0x674   :  { %1714 = vmatpush1.bf16.msra.mxu1 %v3062_v5  ;;  %v3133_v5 = vld [vmem:[#allocation20 + $0x34] ss:$8 sps:$4 sm:$0xff]  }
 0x675   :  { %1715 = vmatprep.subr.bf16.mxu1 %v3067_v29  ;;  %v3131_v29 = vld [vmem:[#allocation20 + $0x30] ss:$8 sps:$4 sm:$0xff]  }
 0x678   :  { %1716 = vmatpush1.bf16.msra.mxu1 %v3065_v30  ;;  %v3136_v30 = vld [vmem:[#allocation20 + $0x44] ss:$8 sps:$4 sm:$0xff]  }
 0x679   :  { %1717 = vmatprep.subr.bf16.mxu1 %v3070_v32  ;;  %v3134_v32 = vld [vmem:[#allocation20 + $0x40] ss:$8 sps:$4 sm:$0xff]  }
 0x67c   :  { %1718 = vmatpush1.bf16.msra.mxu1 %v3068_v33  ;;  %v3139_v33 = vld [vmem:[#allocation20 + $0x54] ss:$8 sps:$4 sm:$0xff]  }
 0x67d   :  { %1719 = vmatprep.subr.bf16.mxu1 %v3073_v43  ;;  %v3154_v43 = vld [vmem:[#allocation20 + $0xa4] ss:$8 sps:$4 sm:$0xff]  }
 0x680   :  { %1720 = vmatpush1.bf16.msra.mxu1 %v3071_v44  ;;  %v3152_v44 = vld [vmem:[#allocation20 + $0xa0] ss:$8 sps:$4 sm:$0xff]  }
 0x681   :  { %2203 = vmatprep.subr.bf16.mxu1 %v3124_v25 }
 0x736   :  { %v1468_v34 = vpop.f32.mrb[12].mxu1 }
 0x737   :  { %v1469_v36 = vadd.f32 %v1468_v34, %v1380_v13  ;;  %v2837_v37 = vpop.f32.mrb[13].mxu1  ;;  %v3137_v34 = vld [vmem:[#allocation20 + $0x50] ss:$8 sps:$4 sm:$0xff]  }
 0x738   :  { %v1471_v38 = vpop.f32.mrb[14].mxu1  ;;  %v3145_v37 = vld [vmem:[#allocation20 + $0x74] ss:$8 sps:$4 sm:$0xff]  }
 0x739   :  { %v1481_v39 = vadd.f32 %v2584_v35, %v1469_v36  ;;  %v2838_v40 = vpop.f32.mrb[15].mxu1  ;;  %v3142_v35 = vld [vmem:[#allocation20 + $0x64] ss:$8 sps:$4 sm:$0xff]   ;;  %v3140_v36 = vld [vmem:[#allocation20 + $0x60] ss:$8 sps:$4 sm:$0xff]  }
 0x73a   :  { %v3143_v38 = vld [vmem:[#allocation20 + $0x70] ss:$8 sps:$4 sm:$0xff]   ;;  %v3146_v40 = vld [vmem:[#allocation20 + $0x80] ss:$8 sps:$4 sm:$0xff]  }
 0x73b   :  { %v1482_v41 = vmax.f32 %v1481_v39, 0.0  ;;  %v3148_v39 = vld [vmem:[#allocation20 + $0x84] ss:$8 sps:$4 sm:$0xff]  }
 0x73d   :  { %v1483_v42 = vpack.c.bf16 %v1482_v41, %v1482_v41  ;;  %v3151_v41 = vld [vmem:[#allocation20 + $0x94] ss:$8 sps:$4 sm:$0xff]  }
 0x73f   :  { %2856 = vmatmul.mubr.bf16.vlgmr.msra.gmra.mrb[16].mxu0 %v1483_v42  ;;  %v3149_v42 = vld [vmem:[#allocation20 + $0x90] ss:$8 sps:$4 sm:$0xff]  }
 0x740   :  { %1955 = vmatpush1.bf16.msra.mxu0 %v3074_v45  ;;  %v3157_v45 = vld [vmem:[#allocation20 + $0xb4] ss:$8 sps:$4 sm:$0xff]  }
 0x741   :  { %1956 = vmatprep.subr.bf16.mxu0 %v3079_v47  ;;  %v3160_v47 = vld [vmem:[#allocation20 + $0xc4] ss:$8 sps:$4 sm:$0xff]  }
 0x744   :  { %1957 = vmatpush1.bf16.msra.mxu0 %v3077_v48  ;;  %v3158_v48 = vld [vmem:[#allocation20 + $0xc0] ss:$8 sps:$4 sm:$0xff]  }
 0x745   :  { %1958 = vmatprep.subr.bf16.mxu0 %v3082_v49  ;;  %v3163_v49 = vld [vmem:[#allocation20 + $0xd4] ss:$8 sps:$4 sm:$0xff]  }
 0x748   :  { %1959 = vmatpush1.bf16.msra.mxu0 %v3080_v50  ;;  %v3161_v50 = vld [vmem:[#allocation20 + $0xd0] ss:$8 sps:$4 sm:$0xff]  }
 0x749   :  { %1960 = vmatprep.subr.bf16.mxu0 %v3085_v51  ;;  %v1613_v51 = vld [vmem:[%s4070_s19] sm:$0x3] }
 0x74c   :  { %1961 = vmatpush1.bf16.msra.mxu0 %v3083_v52  ;;  %v1618_v52 = vrot.slane %v1613_v51, %v3927_v18 }
 0x74d   :  { %1962 = vmatprep.subr.bf16.mxu0 %v3088_v53  ;;  %v1622_v53 = vrot.slane %v1613_v51, %v3932_v20 }
 0x750   :  { %1963 = vmatpush1.bf16.msra.mxu0 %v3086_v54 }
 0x751   :  { %1964 = vmatprep.subr.bf16.mxu0 %v3091_v55 }
 0x754   :  { %1965 = vmatpush1.bf16.msra.mxu0 %v3089_v56 }
 0x755   :  { %1966 = vmatprep.subr.bf16.mxu0 %v3094_v57 }
 0x758   :  { %1967 = vmatpush1.bf16.msra.mxu0 %v3092_v58 }
 0x759   :  { %1968 = vmatprep.subr.bf16.mxu0 %v3097_v59 }
 0x75c   :  { %1969 = vmatpush1.bf16.msra.mxu0 %v3095_v60 }
 0x75d   :  { %1970 = vmatprep.subr.bf16.mxu0 %v3100_v61 }
 0x760   :  { %1971 = vmatpush1.bf16.msra.mxu0 %v3098_v62 }
 0x761   :  { %1972 = vmatprep.subr.bf16.mxu0 %v3103_v63 }
 0x764   :  { %1973 = vmatpush1.bf16.msra.mxu0 %v3101_v1  ;;  %v3166_v1 = vld [vmem:[#allocation20 + $0xe4] ss:$8 sps:$4 sm:$0xff]  }
 0x765   :  { %1974 = vmatprep.subr.bf16.mxu0 %v3106_v2  ;;  %v3164_v2 = vld [vmem:[#allocation20 + $0xe0] ss:$8 sps:$4 sm:$0xff]  }
 0x768   :  { %1975 = vmatpush1.bf16.msra.mxu0 %v3104_v3  ;;  %v3169_v3 = vld [vmem:[#allocation20 + $0xf4] ss:$8 sps:$4 sm:$0xff]  }
 0x769   :  { %1976 = vmatprep.subr.bf16.mxu0 %v3109_v4  ;;  %v3167_v4 = vld [vmem:[#allocation20 + $0xf0] ss:$8 sps:$4 sm:$0xff]  }
 0x76c   :  { %1977 = vmatpush1.bf16.msra.mxu0 %v3107_v31  ;;  %v3170_v31 = vld [vmem:[#allocation22 + $0x40] sm:$0xff]  }
 0x76d   :  { %1978 = vmatprep.subr.bf16.mxu0 %v3112_v6  ;;  %v3171_v6 = vld [vmem:[#allocation22] sm:$0xff]  }
 0x770   :  { %1979 = vmatpush1.bf16.msra.mxu0 %v3110_v7  ;;  %v3172_v7 = vld [vmem:[#allocation22 + $0x48] sm:$0xff]  }
 0x771   :  { %1980 = vmatprep.subr.bf16.mxu0 %v3115_v8  ;;  %v3173_v8 = vld [vmem:[#allocation22 + $0x8] sm:$0xff]  }
 0x774   :  { %1981 = vmatpush1.bf16.msra.mxu0 %v3113_v9  ;;  %v3174_v9 = vld [vmem:[#allocation22 + $0x50] sm:$0xff]  }
 0x775   :  { %1982 = vmatprep.subr.bf16.mxu0 %v3118_v19 }
 0x778   :  { %1983 = vmatpush1.bf16.msra.mxu0 %v3116_v21 }
 0x779   :  { %1984 = vmatprep.subr.bf16.mxu0 %v3121_v22 }
 0x77c   :  { %1985 = vmatpush1.bf16.msra.mxu0 %v3119_v23 }
 0x77d   :  { %2751 = vmatprep.subr.bf16.mxu0 %v3170_v31 }
 0x812   :  { %v1589_v11 = vpop.f32.mrb[16].mxu0 }
 0x813   :  { %v1590_v12 = vadd.f32 %v2585_v10, %v1589_v11  ;;  %v2857_v13 = vpop.f32.mrb[17].mxu0  ;;  %v3175_v10 = vld [vmem:[#allocation22 + $0x10] sm:$0xff]   ;;  %v3176_v11 = vld [vmem:[#allocation22 + $0x58] sm:$0xff]  }
 0x814   :  { %v1592_v14 = vpop.f32.mrb[18].mxu0  ;;  %v3178_v13 = vld [vmem:[#allocation22 + $0x60] sm:$0xff]  }
 0x815   :  { %v1595_v15 = vmax.f32 %v1590_v12, 0.0  ;;  %v2858_v16 = vpop.f32.mrb[19].mxu0  ;;  %v3177_v12 = vld [vmem:[#allocation22 + $0x18] sm:$0xff]   ;;  %v3179_v14 = vld [vmem:[#allocation22 + $0x20] sm:$0xff]  }
 0x816   :  { %v3181_v16 = vld [vmem:[#allocation22 + $0x28] sm:$0xff]  }
 0x817   :  { %v1596_v17 = vpack.c.bf16 %v1595_v15, %v1595_v15  ;;  %v3180_v15 = vld [vmem:[#allocation22 + $0x68] sm:$0xff]  }
 0x819   :  { %1738 = vmatmul.mubr.bf16.vlgmr.msra.gmra.mrb[16].mxu1 %v1596_v17  ;;  %v1782_v17 = vld [vmem:[%s4072_s21] sm:$0x3] }
 0x81a   :  { %2204 = vmatpush1.bf16.msra.mxu1 %v3122_v24  ;;  %v1787_v19 = vrot.slane %v1782_v17, %v3927_v18  ;;  %v1791_v21 = vrot.slane %v1782_v17, %v3932_v20 }
 0x81b   :  { %2205 = vmatprep.subr.bf16.mxu1 %v3127_v0 }
 0x81e   :  { %2206 = vmatpush1.bf16.msra.mxu1 %v3125_v26 }
 0x81f   :  { %2207 = vmatprep.subr.bf16.mxu1 %v3130_v27 }
 0x822   :  { %2208 = vmatpush1.bf16.msra.mxu1 %v3128_v28 }
 0x823   :  { %2209 = vmatprep.subr.bf16.mxu1 %v3133_v5 }
 0x826   :  { %2210 = vmatpush1.bf16.msra.mxu1 %v3131_v29 }
 0x827   :  { %2211 = vmatprep.subr.bf16.mxu1 %v3136_v30  ;;  %v3182_v30 = vld [vmem:[#allocation22 + $0x70] sm:$0xff]  }
 0x82a   :  { %2212 = vmatpush1.bf16.msra.mxu1 %v3134_v32  ;;  %v3183_v32 = vld [vmem:[#allocation22 + $0x30] sm:$0xff]  }
 0x82b   :  { %2213 = vmatprep.subr.bf16.mxu1 %v3139_v33  ;;  %v3184_v33 = vld [vmem:[#allocation22 + $0x78] sm:$0xff]  }
 0x82e   :  { %2214 = vmatpush1.bf16.msra.mxu1 %v3137_v34  ;;  %v3185_v34 = vld [vmem:[#allocation22 + $0x38] sm:$0xff]  }
 0x82f   :  { %2215 = vmatprep.subr.bf16.mxu1 %v3142_v35  ;;  %v2031_v35 = vld [vmem:[%s4074_s23] sm:$0x3]  ;;  %s3472_s23 = scalar_lea.vmem %s2441_s24, 128 }
 0x830   :  { %p3473_p6 = scmp.ne.s32.totalorder %s2441_s24, %s3472_s23  ;;  %p3478_p8 = scmp.lt.s32.totalorder %s3472_s23, %s3472_s23 }
 0x832   :  { %2216 = vmatpush1.bf16.msra.mxu1 %v3140_v36  ;;  %v2036_v36 = vrot.slane %v2031_v35, %v3927_v18  ;;  %p3479_p9 = por %p3478_p8, %p3477_p7 }
 0x833   :  { %2217 = vmatprep.subr.bf16.mxu1 %v3145_v37  ;;  %v2040_v37 = vrot.slane %v2031_v35, %v3932_v20 }
 0x834   :  { %p3480_p10 = pnand %p3479_p9, %p3473_p6 }
 0x836   :  { %2218 = vmatpush1.bf16.msra.mxu1 %v3143_v38 }
 0x837   :  { %2219 = vmatprep.subr.bf16.mxu1 %v3148_v39 }
 0x83a   :  { %2220 = vmatpush1.bf16.msra.mxu1 %v3146_v40 }
 0x83b   :  { %2221 = vmatprep.subr.bf16.mxu1 %v3151_v41 }
 0x83e   :  { %2222 = vmatpush1.bf16.msra.mxu1 %v3149_v42 }
 0x83f   :  { %2223 = vmatprep.subr.bf16.mxu1 %v3154_v43 }
 0x842   :  { %2224 = vmatpush1.bf16.msra.mxu1 %v3152_v44 }
 0x843   :  { %2225 = vmatprep.subr.bf16.mxu1 %v3157_v45 }
 0x846   :  { %2226 = vmatpush1.bf16.msra.mxu1 %v3155_v46 }
 0x847   :  { %2227 = vmatprep.subr.bf16.mxu1 %v3160_v47 }
 0x84a   :  { %2228 = vmatpush1.bf16.msra.mxu1 %v3158_v48 }
 0x84b   :  { %2229 = vmatprep.subr.bf16.mxu1 %v3163_v49 }
 0x84e   :  { %2230 = vmatpush1.bf16.msra.mxu1 %v3161_v50 }
 0x84f   :  { %2231 = vmatprep.subr.bf16.mxu1 %v3166_v1 }
 0x852   :  { %2232 = vmatpush1.bf16.msra.mxu1 %v3164_v2 }
 0x853   :  { %2233 = vmatprep.subr.bf16.mxu1 %v3169_v3 }
 0x856   :  { %2234 = vmatpush1.bf16.msra.mxu1 %v3167_v4 }
 0x8ec   :  { %v1739_v54 = vpop.f32.mrb[16].mxu1 }
 0x8ed   :  { %v1740_v55 = vadd.f32 %v1739_v54, %v1618_v52  ;;  %v1741_v56 = vpop.f32.mrb[17].mxu1 }
 0x8ee   :  { %v1742_v57 = vadd.f32 %v1741_v56, %v1622_v53  ;;  %v1743_v58 = vpop.f32.mrb[18].mxu1 }
 0x8ef   :  { %v1746_v59 = vmax.f32 %v1740_v55, 0.0  ;;  %v1744_v60 = vpop.f32.mrb[19].mxu1 }
 0x8f0   :  { %v1747_v61 = vmax.f32 %v1742_v57, 0.0 }
 0x8f1   :  { %v1748_v63 = vpack.c.bf16 %v1746_v59, %v1746_v59 }
 0x8f2   :  { %v1749_v62 = vpack.c.bf16 %v1747_v61, %v1747_v61 }
 0x8f4   :  { %1986 = vmatprep.mubr.bf16.mxu0 %v1749_v62 }
 0x8f5   :  { %1987 = vmatmul.mubr.bf16.vlgmr.msra.gmra.mrb[20].mxu0 %v1748_v63 }
 0x8f6   :  { %2752 = vmatpush3.bf16.msra.mxu0 %v3171_v6 }
 0x8f7   :  { %2753 = vmatprep.subr.bf16.mxu0 %v3172_v7 }
 0x8fa   :  { %2754 = vmatpush3.bf16.msra.mxu0 %v3173_v8 }
 0x8fb   :  { %2755 = vmatprep.subr.bf16.mxu0 %v3174_v9 }
 0x8fe   :  { %2756 = vmatpush3.bf16.msra.mxu0 %v3175_v10 }
 0x8ff   :  { %2757 = vmatprep.subr.bf16.mxu0 %v3176_v11 }
 0x902   :  { %2758 = vmatpush3.bf16.msra.mxu0 %v3177_v12 }
 0x903   :  { %2759 = vmatprep.subr.bf16.mxu0 %v3178_v13 }
 0x906   :  { %2760 = vmatpush3.bf16.msra.mxu0 %v3179_v14 }
 0x907   :  { %2761 = vmatprep.subr.bf16.mxu0 %v3180_v15 }
 0x90a   :  { %2762 = vmatpush3.bf16.msra.mxu0 %v3181_v16 }
 0x90b   :  { %2763 = vmatprep.subr.bf16.mxu0 %v3182_v30 }
 0x90e   :  { %2764 = vmatpush3.bf16.msra.mxu0 %v3183_v32 }
 0x90f   :  { %2765 = vmatprep.subr.bf16.mxu0 %v3184_v33 }
 0x912   :  { %2766 = vmatpush3.bf16.msra.mxu0 %v3185_v34 }
 0x9c8   :  { %v1988_v22 = vpop.f32.mrb[20].mxu0 }
 0x9c9   :  { %v1989_v23 = vadd.f32 %v1988_v22, %v1787_v19  ;;  %v1990_v24 = vpop.f32.mrb[21].mxu0 }
 0x9ca   :  { %v1991_v25 = vadd.f32 %v1990_v24, %v1791_v21  ;;  %v1992_v0 = vpop.f32.mrb[22].mxu0 }
 0x9cb   :  { %v1995_v26 = vmax.f32 %v1989_v23, 0.0  ;;  %v1993_v27 = vpop.f32.mrb[23].mxu0 }
 0x9cc   :  { %v1996_v28 = vmax.f32 %v1991_v25, 0.0 }
 0x9cd   :  { %v1997_v29 = vpack.c.bf16 %v1995_v26, %v1995_v26 }
 0x9ce   :  { %v1998_v5 = vpack.c.bf16 %v1996_v28, %v1996_v28 }
 0x9d0   :  { %2235 = vmatprep.mubr.bf16.mxu1 %v1998_v5 }
 0x9d1   :  { %2236 = vmatmul.mubr.bf16.vlgmr.msra.gmra.mrb[20].mxu1 %v1997_v29 }
 0xaa4   :  { %v2237_v38 = vpop.f32.mrb[20].mxu1 }
 0xaa5   :  { %v2238_v39 = vadd.f32 %v2237_v38, %v2036_v36  ;;  %v2239_v40 = vpop.f32.mrb[21].mxu1 }
 0xaa6   :  { %v2240_v41 = vadd.f32 %v2239_v40, %v2040_v37  ;;  %v2241_v42 = vpop.f32.mrb[22].mxu1 }
 0xaa7   :  { %v2244_v43 = vmax.f32 %v2238_v39, 0.0  ;;  %v2242_v44 = vpop.f32.mrb[23].mxu1 }
 0xaa8   :  { %v2245_v45 = vmax.f32 %v2240_v41, 0.0 }
 0xaa9   :  { %v2246_v47 = vpack.c.bf16 %v2244_v43, %v2244_v43 }
 0xaaa   :  { %v2247_v46 = vpack.c.bf16 %v2245_v45, %v2245_v45 }
 0xaac   :  { %2415 = vmatprep.mubr.bf16.mxu0 %v2247_v46 }
 0xaad   :  { %2416 = vmatmul.mubr.bf16.vlgmr.msra.gmra.mrb[24].mxu0 %v2246_v47 }
 0xaae   :  { %3483 = shalt.err (!%p3480_p10)
}
 0xaaf   :  { %s4115_s4 = sld [smem:[#allocation49_spill]] }
 0xab5   :  { %s3484_s29 = scalar_lea.hbm %s4115_s4, 128 }
 0xab6   :  { %p3485_p11 = scmp.ne.s32.totalorder %s4115_s4, %s3484_s29  ;;  %p3488_p12 = scmp.lt.u32.totalorder %s3484_s29, %s4115_s4 }
 0xab8   :  { %p3490_p13 = pnand %p3488_p12, %p3485_p11 }
 0xaba   :  { %3493 = shalt.err (!%p3490_p13)
}
 0xabb   :  { %2443 = dma.vmem_to_hbm [thread:$0]  %s2441_s24, 128, %s4115_s4, [#allocation25]  }
 0xabc   :  { %s4116_s10 = sld [smem:[#allocation47_spill]]  ;;  %s3555_s18 = smov [#allocation23]  }
 0xabd   :  { %s2430_s13 = sshll.u32 %s3555_s18, 4  ;;  %s2431_s13 = int_to_ptr.vmem [resolvable:$true] %s2430_s13 }
 0xabe   :  { %s3494_s27 = scalar_lea.vmem %s2431_s13, 128  ;;  %p3499_p1 = scmp.lt.s32.totalorder %s2431_s13, %s2431_s13 }
 0xabf   :  { %p3495_p0 = scmp.ne.s32.totalorder %s2431_s13, %s3494_s27  ;;  %p3500_p2 = scmp.lt.s32.totalorder %s3494_s27, %s3494_s27 }
 0xac1   :  { %p3501_p3 = por %p3500_p2, %p3499_p1 }
 0xac2   :  { %v2674_v20 = vld [vmem:[%s4116_s10] ss:$0 sm:$0xff] }
 0xac3   :  { %p3502_p4 = pnand %p3501_p3, %p3495_p0 }
 0xb80   :  { %v2767_v18 = vpop.f32.mrb[24].mxu0 }
 0xb81   :  { %v2768_v48 = vpop.f32.mrb[25].mxu0 }
 0xb82   :  { %v2769_v49 = vadd.f32 %v2768_v48, %v2767_v18  ;;  %v2770_v50 = vpop.f32.mrb[26].mxu0 }
 0xb83   :  { %v2771_v51 = vpop.f32.mrb[27].mxu0 }
 0xb84   :  { %v2418_v52 = vadd.f32 %v2769_v49, %v2674_v20 }
 0xb86   :  { %2423 = vst [vmem:[#allocation23] sm:$0xff] %v2418_v52 }
 0xb87   :  { %3505 = shalt.err (!%p3502_p4)
}
 0xb88   :  { %s4117_s12 = sld [smem:[#allocation48_spill]] }
 0xb8e   :  { %s3506_s3 = scalar_lea.hbm %s4117_s12, 128 }
 0xb8f   :  { %p3507_p5 = scmp.ne.s32.totalorder %s4117_s12, %s3506_s3  ;;  %p3510_p6 = scmp.lt.u32.totalorder %s3506_s3, %s4117_s12 }
 0xb91   :  { %p3512_p7 = pnand %p3510_p6, %p3507_p5 }
 0xb93   :  { %3515 = shalt.err (!%p3512_p7)
}
 0xb94   :  { %2433 = dma.vmem_to_hbm [thread:$0]  %s2431_s13, 128, %s4117_s12, [#allocation4]  }
 0xb95   :  { %3530 = dma.done.wait [#allocation4], 128  }
 0xb96   :  { %3531 = vsyncadd [#allocation4], 4294967168 }
 0xb97   :  { %3532 = dma.done.wait [#allocation25], 128  }
 0xb98   :  { %3533 = vsyncadd [#allocation25], 4294967168 }
 0xb99   :  { %2450 = vsyncpa [#allocation3], 1 }
 0xb9a   :  { %2451 = vsyncpa [#allocation6], 1 }
 0xb9b   :  { %2452 = vsyncpa [#allocation9], 1 }
 0xb9c   :  { %2453 = vsyncpa [#allocation12], 1 }
 0xb9d   :  { %2454 = vsyncpa [#allocation15], 1 }
 0xb9e   :  { %2455 = vsyncpa [#allocation18], 1 }
 0xb9f   :  { %2456 = vsyncpa [#allocation21], 1 }
 0xba0   :  { %2457 = vsyncpa [#allocation4], 1 }
 0xba1   :  { %2458 = vsyncpa [#allocation25], 1 }

</bundles_post_ra>
